<compile_context>
chip_gen: v7x
topology: tpu7x:2x2x1
jax: 0.10.0
libtpu: 0.0.40
codegen_flags: <defaults>
</compile_context>

<pallas_src>
import jax
import jax.numpy as jnp
from jax import lax
from jax.experimental import pallas as pl
from jax.experimental.pallas import tpu as pltpu


def lstm_kernel(x_ref, len_ref, w_ih_ref, w_hh_ref, b_ref,
                h_out_ref, c_out_ref, seq_ref, gates_ref, h_ref, c_ref):
    """One grid step == one LSTM layer.

    Refs (time-major, batch padded to Bp = multiple of 8):
      x_ref    : (T*Bp, D)    padded embedded captions (consumed by layer 0)
      len_ref  : (Bp, 1)      int32 per-sequence lengths (packed-seq mask source)
      w_ih_ref : (1, D, 4H)   this layer's input weights (row-padded, transposed)
      w_hh_ref : (1, H, 4H)   this layer's recurrent weights (transposed)
      b_ref    : (1, 1, 4H)   combined bias b_ih + b_hh
      h_out/c_out : (1, Bp, H) final states for this layer
      seq_ref  : (T*Bp, D)    scratch: layer input / output hidden sequence
      gates_ref: (T*Bp, 4H)   scratch: hoisted input-gate pre-activations
      h_ref/c_ref : (Bp, H)   scratch: running h / c state
    """
    layer = pl.program_id(0)
    n_layers = pl.num_programs(0)
    B, H = h_ref.shape
    TB, D = seq_ref.shape
    T = TB // B
    not_last = layer != (n_layers - 1)

    # Layer 0 consumes the (zero-padded) embeddings; deeper layers consume the
    # previous layer's hidden sequence that the prior grid step left in seq_ref.
    @pl.when(layer == 0)
    def _():
        seq_ref[...] = x_ref[...]

    # Hoisted input projection + bias: one big MXU matmul instead of T tiny
    # (B-row) matmuls sitting on the serial recurrence path.
    gates_ref[...] = (
        jnp.dot(seq_ref[...], w_ih_ref[0], preferred_element_type=jnp.float32)
        + b_ref[0])

    w_hh = w_hh_ref[0]                       # (H, 4H), hoisted load
    lens = len_ref[...]                      # (B, 1) int32, hoisted load

    # initial_hidden_state=None -> zeros
    h_ref[...] = jnp.zeros_like(h_ref)
    c_ref[...] = jnp.zeros_like(c_ref)

    def step(t, carry):
        row = pl.multiple_of(t * B, B)
        h = h_ref[...]
        c = c_ref[...]
        gates = gates_ref[pl.ds(row, B), :] + jnp.dot(
            h, w_hh, preferred_element_type=jnp.float32)        # (B, 4H)
        # PyTorch gate order: i, f, g, o
        i = jax.nn.sigmoid(gates[:, 0 * H:1 * H])
        f = jax.nn.sigmoid(gates[:, 1 * H:2 * H])
        g = jnp.tanh(gates[:, 2 * H:3 * H])
        o = jax.nn.sigmoid(gates[:, 3 * H:4 * H])
        c_new = f * c + i * g
        h_new = o * jnp.tanh(c_new)
        # pack_padded_sequence semantics: state frozen once t >= length[b]
        m = lens > t                                             # (B, 1) bool
        h_w = jnp.where(m, h_new, h)
        c_w = jnp.where(m, c_new, c)
        h_ref[...] = h_w
        c_ref[...] = c_w

        # The last layer's hidden sequence is never consumed -> skip the store.
        @pl.when(not_last)
        def _():
            if D == H:
                seq_ref[pl.ds(row, B), :] = h_w
            else:
                seq_ref[pl.ds(row, B), 0:H] = h_w
        return carry

    # T is small & static: full unroll gives the scheduler cross-step visibility.
    lax.fori_loop(0, T, step, 0, unroll=True)

    h_out_ref[0] = h_ref[...]
    c_out_ref[0] = c_ref[...]


def decoder_rnn_forward(captions, lengths, emb_table, w_ih, w_hh, b):
    """Returns (h_n, c_n), each (num_layers, B, H) — same as DecoderRNN.forward."""
    B, T = captions.shape
    L, D, fourH = w_ih.shape
    H = fourH // 4
    E = emb_table.shape[1]
    Bp = ((B + 7) // 8) * 8                   # pad batch to a sublane multiple

    # Embedding gather (glue) + time-major layout, padded batch & feature dims.
    x = jnp.take(emb_table, captions, axis=0).astype(jnp.float32)   # (B, T, E)
    x = jnp.transpose(x, (1, 0, 2))                                  # (T, B, E)
    x = jnp.pad(x, ((0, 0), (0, Bp - B), (0, D - E)))                # (T, Bp, D)
    x = x.reshape(T * Bp, D)

    # Padded rows get length 0 so their (zero) state never updates.
    len_col = jnp.pad(lengths.astype(jnp.int32), (0, Bp - B)).reshape(Bp, 1)

    h_n, c_n = pl.pallas_call(
        lstm_kernel,
        out_shape=(jax.ShapeDtypeStruct((L, Bp, H), jnp.float32),
                   jax.ShapeDtypeStruct((L, Bp, H), jnp.float32)),
        grid_spec=pltpu.PrefetchScalarGridSpec(
            num_scalar_prefetch=0,
            grid=(L,),
            in_specs=[
                pl.BlockSpec((T * Bp, D), lambda l: (0, 0)),        # embeddings
                pl.BlockSpec((Bp, 1), lambda l: (0, 0)),            # lengths
                pl.BlockSpec((1, D, fourH), lambda l: (l, 0, 0)),   # W_ih (stacked)
                pl.BlockSpec((1, H, fourH), lambda l: (l, 0, 0)),   # W_hh
                pl.BlockSpec((1, 1, fourH), lambda l: (l, 0, 0)),   # bias
            ],
            out_specs=(
                pl.BlockSpec((1, Bp, H), lambda l: (l, 0, 0)),
                pl.BlockSpec((1, Bp, H), lambda l: (l, 0, 0)),
            ),
            scratch_shapes=[
                pltpu.VMEM((T * Bp, D), jnp.float32),       # layer in/out sequence
                pltpu.VMEM((T * Bp, fourH), jnp.float32),   # hoisted gate pre-acts
                pltpu.VMEM((Bp, H), jnp.float32),           # h state
                pltpu.VMEM((Bp, H), jnp.float32),           # c state
            ]),
        compiler_params=pltpu.CompilerParams(
            dimension_semantics=("arbitrary",)),            # layers are sequential
    )(x, len_col, w_ih, w_hh, b)
    return h_n[:, :B], c_n[:, :B]


if __name__ == "__main__":
    # Small shapes consistent with the module.
    embed_size, hidden_size, vocab_size, num_layers = 16, 32, 50, 2
    B, T = 4, 8
    D = max(embed_size, hidden_size)

    key = jax.random.PRNGKey(0)
    keys = jax.random.split(key, 8)

    # nn.Embedding weight ~ U(-0.1, 0.1)
    emb_table = jax.random.uniform(keys[0], (vocab_size, embed_size),
                                   jnp.float32, -0.1, 0.1)
    # TODO(synk): self.linear (weight ~ U(-0.1,0.1), bias=0) is built in __init__
    # but never used in forward(); initialized here only for parity.
    lin_w = jax.random.uniform(keys[1], (vocab_size, hidden_size),
                               jnp.float32, -0.1, 0.1)
    lin_b = jnp.zeros((vocab_size,), jnp.float32)

    # nn.LSTM default init ~ U(-1/sqrt(H), 1/sqrt(H)), per layer:
    # w_ih (4H, in), w_hh (4H, H), b_ih (4H,), b_hh (4H,)
    k = 1.0 / float(hidden_size) ** 0.5
    kk = jax.random.split(keys[2], num_layers * 4)
    w_ih_list, w_hh_list, b_ih_list, b_hh_list = [], [], [], []
    for l in range(num_layers):
        in_dim = embed_size if l == 0 else hidden_size
        w_ih_list.append(jax.random.uniform(kk[4 * l + 0], (4 * hidden_size, in_dim),
                                            jnp.float32, -k, k))
        w_hh_list.append(jax.random.uniform(kk[4 * l + 1], (4 * hidden_size, hidden_size),
                                            jnp.float32, -k, k))
        b_ih_list.append(jax.random.uniform(kk[4 * l + 2], (4 * hidden_size,),
                                            jnp.float32, -k, k))
        b_hh_list.append(jax.random.uniform(kk[4 * l + 3], (4 * hidden_size,),
                                            jnp.float32, -k, k))

    # Kernel-layout parameters: all W transposed to (in_dim, 4H); W_ih stacked
    # into a single (L, D, 4H) tensor with zero-padded rows (no dummy slot).
    w_ih = jnp.stack(
        [jnp.pad(w.T, ((0, D - w.shape[1]), (0, 0))) for w in w_ih_list],
        axis=0)                                                          # (L, D, 4H)
    w_hh = jnp.stack([w.T for w in w_hh_list], axis=0)                   # (L, H, 4H)
    b = jnp.stack([(bi + bh)[None, :] for bi, bh in zip(b_ih_list, b_hh_list)],
                  axis=0)                                                # (L, 1, 4H)

    # Inputs: integer captions and (sorted, decreasing) lengths as required by
    # pack_padded_sequence.
    captions = jax.random.randint(keys[3], (B, T), 0, vocab_size, dtype=jnp.int32)
    lengths = jnp.array([8, 7, 5, 3], dtype=jnp.int32)

    h_n, c_n = decoder_rnn_forward(captions, lengths, emb_table, w_ih, w_hh, b)
    jax.block_until_ready((h_n, c_n))

    # Pure-JAX reference (packed-sequence LSTM semantics via masking).
    def ref_forward():
        x = jnp.take(emb_table, captions, axis=0)   # (B, T, E)
        inp = x
        hs, cs = [], []
        H = hidden_size
        for l in range(num_layers):
            Wih, Whh = w_ih_list[l], w_hh_list[l]
            bi, bh = b_ih_list[l], b_hh_list[l]
            h = jnp.zeros((B, H), jnp.float32)
            c = jnp.zeros((B, H), jnp.float32)
            outs = []
            for t in range(T):
                x_t = inp[:, t, :]
                gates = x_t @ Wih.T + bi + h @ Whh.T + bh
                i = jax.nn.sigmoid(gates[:, 0 * H:1 * H])
                f = jax.nn.sigmoid(gates[:, 1 * H:2 * H])
                g = jnp.tanh(gates[:, 2 * H:3 * H])
                o = jax.nn.sigmoid(gates[:, 3 * H:4 * H])
                c_new = f * c + i * g
                h_new = o * jnp.tanh(c_new)
                m = (t < lengths).astype(jnp.float32)[:, None]
                h = m * h_new + (1.0 - m) * h
                c = m * c_new + (1.0 - m) * c
                outs.append(h)
            inp = jnp.stack(outs, axis=1)
            hs.append(h)
            cs.append(c)
        return jnp.stack(hs), jnp.stack(cs)

    h_ref_v, c_ref_v = ref_forward()
    assert jnp.allclose(h_n, h_ref_v, atol=1e-5), "h_n mismatch vs reference"
    assert jnp.allclose(c_n, c_ref_v, atol=1e-5), "c_n mismatch vs reference"
    print("KERNEL_OK")
</pallas_src>

<mosaic_0001>
module attributes {stable_mosaic.version = 11 : i64} {
  func.func @lstm_kernel(%arg0: i32, %arg1: memref<64x32xf32, #tpu.memory_space<vmem>>, %arg2: memref<8x1xi32, #tpu.memory_space<vmem>>, %arg3: memref<1x32x128xf32, #tpu.memory_space<vmem>>, %arg4: memref<1x32x128xf32, #tpu.memory_space<vmem>>, %arg5: memref<1x1x128xf32, #tpu.memory_space<vmem>>, %arg6: memref<1x8x32xf32, #tpu.memory_space<vmem>>, %arg7: memref<1x8x32xf32, #tpu.memory_space<vmem>>, %arg8: memref<64x32xf32, #tpu.memory_space<vmem>>, %arg9: memref<64x128xf32, #tpu.memory_space<vmem>>, %arg10: memref<8x32xf32, #tpu.memory_space<vmem>>, %arg11: memref<8x32xf32, #tpu.memory_space<vmem>>) attributes {dimension_semantics = [#tpu.dimension_semantics<arbitrary>], iteration_bounds = array<i64: 2>, scalar_prefetch = 0 : i64, scratch_operands = 4 : i64, tpu.core_type = #tpu.core_type<tc>, window_params = [{pipeline_mode = #tpu.pipeline_mode<synchronous>, transform_indices = @transform_0, window_bounds = array<i64: 64, 32>}, {pipeline_mode = #tpu.pipeline_mode<synchronous>, transform_indices = @transform_1, window_bounds = array<i64: 8, 1>}, {transform_indices = @transform_2, window_bounds = array<i64: 1, 32, 128>}, {transform_indices = @transform_3, window_bounds = array<i64: 1, 32, 128>}, {transform_indices = @transform_4, window_bounds = array<i64: 1, 1, 128>}, {transform_indices = @transform_5, window_bounds = array<i64: 1, 8, 32>}, {transform_indices = @transform_6, window_bounds = array<i64: 1, 8, 32>}]} {
    %c1_i32 = arith.constant 1 : i32
    %0 = arith.cmpi ne, %arg0, %c1_i32 : i32
    %c0_i32 = arith.constant 0 : i32
    %1 = arith.cmpi eq, %arg0, %c0_i32 : i32
    %2 = arith.extui %1 : i1 to i32
    %c0_i32_0 = arith.constant 0 : i32
    %3 = arith.cmpi ne, %2, %c0_i32_0 : i32
    scf.if %3 {
      %c0_153 = arith.constant 0 : index
      %c0_154 = arith.constant 0 : index
      %388 = vector.load %arg1[%c0_153, %c0_154] : memref<64x32xf32, #tpu.memory_space<vmem>>, vector<64x32xf32>
      %c0_155 = arith.constant 0 : index
      %c0_156 = arith.constant 0 : index
      %389 = vector.load %arg8[%c0_155, %c0_156] : memref<64x32xf32, #tpu.memory_space<vmem>>, vector<64x32xf32>
      tpu.vector_store %arg8[%c0_155, %c0_156], %388 {strides = array<i32>} : memref<64x32xf32, #tpu.memory_space<vmem>>, vector<64x32xf32>,
    } else {
    }
    %c0 = arith.constant 0 : index
    %c0_1 = arith.constant 0 : index
    %4 = vector.load %arg8[%c0, %c0_1] : memref<64x32xf32, #tpu.memory_space<vmem>>, vector<64x32xf32>
    %c0_2 = arith.constant 0 : index
    %c0_3 = arith.constant 0 : index
    %c0_4 = arith.constant 0 : index
    %5 = vector.load %arg3[%c0_2, %c0_3, %c0_4] : memref<1x32x128xf32, #tpu.memory_space<vmem>>, vector<1x32x128xf32>
    %6 = vector.shape_cast %5 : vector<1x32x128xf32> to vector<32x128xf32>
    %cst = arith.constant dense<0.000000e+00> : vector<64x128xf32>
    %7 = tpu.matmul %4, %6, %cst {dimension_numbers = #tpu.dot_dimension_numbers<[1], [0], [0], [1], [0, 0, 1, 1], [], []>} : vector<64x32xf32>, vector<32x128xf32>, vector<64x128xf32> -> vector<64x128xf32>
    %c0_5 = arith.constant 0 : index
    %c0_6 = arith.constant 0 : index
    %c0_7 = arith.constant 0 : index
    %8 = vector.load %arg5[%c0_5, %c0_6, %c0_7] : memref<1x1x128xf32, #tpu.memory_space<vmem>>, vector<1x1x128xf32>
    %9 = vector.shape_cast %8 : vector<1x1x128xf32> to vector<1x128xf32>
    %10 = vector.broadcast %9 : vector<1x128xf32> to vector<64x128xf32>
    %11 = arith.addf %7, %10 : vector<64x128xf32>
    %c0_8 = arith.constant 0 : index
    %c0_9 = arith.constant 0 : index
    %12 = vector.load %arg9[%c0_8, %c0_9] : memref<64x128xf32, #tpu.memory_space<vmem>>, vector<64x128xf32>
    tpu.vector_store %arg9[%c0_8, %c0_9], %11 {strides = array<i32>} : memref<64x128xf32, #tpu.memory_space<vmem>>, vector<64x128xf32>,
    %c0_10 = arith.constant 0 : index
    %c0_11 = arith.constant 0 : index
    %c0_12 = arith.constant 0 : index
    %13 = vector.load %arg4[%c0_10, %c0_11, %c0_12] : memref<1x32x128xf32, #tpu.memory_space<vmem>>, vector<1x32x128xf32>
    %14 = vector.shape_cast %13 : vector<1x32x128xf32> to vector<32x128xf32>
    %c0_13 = arith.constant 0 : index
    %c0_14 = arith.constant 0 : index
    %15 = vector.load %arg2[%c0_13, %c0_14] : memref<8x1xi32, #tpu.memory_space<vmem>>, vector<8x1xi32>
    %cst_15 = arith.constant 0.000000e+00 : f32
    %16 = vector.broadcast %cst_15 : f32 to vector<8x32xf32>
    %c0_16 = arith.constant 0 : index
    %c0_17 = arith.constant 0 : index
    %17 = vector.load %arg10[%c0_16, %c0_17] : memref<8x32xf32, #tpu.memory_space<vmem>>, vector<8x32xf32>
    tpu.vector_store %arg10[%c0_16, %c0_17], %16 {strides = array<i32>} : memref<8x32xf32, #tpu.memory_space<vmem>>, vector<8x32xf32>,
    %cst_18 = arith.constant 0.000000e+00 : f32
    %18 = vector.broadcast %cst_18 : f32 to vector<8x32xf32>
    %c0_19 = arith.constant 0 : index
    %c0_20 = arith.constant 0 : index
    %19 = vector.load %arg11[%c0_19, %c0_20] : memref<8x32xf32, #tpu.memory_space<vmem>>, vector<8x32xf32>
    tpu.vector_store %arg11[%c0_19, %c0_20], %18 {strides = array<i32>} : memref<8x32xf32, #tpu.memory_space<vmem>>, vector<8x32xf32>,
    %c0_i32_21 = arith.constant 0 : i32
    %c8_i32 = arith.constant 8 : i32
    %20 = arith.muli %c0_i32_21, %c8_i32 : i32
    %21 = tpu.assume_multiple %20, 8 : i32
    %c0_22 = arith.constant 0 : index
    %c0_23 = arith.constant 0 : index
    %22 = vector.load %arg10[%c0_22, %c0_23] : memref<8x32xf32, #tpu.memory_space<vmem>>, vector<8x32xf32>
    %c0_24 = arith.constant 0 : index
    %c0_25 = arith.constant 0 : index
    %23 = vector.load %arg11[%c0_24, %c0_25] : memref<8x32xf32, #tpu.memory_space<vmem>>, vector<8x32xf32>
    %24 = arith.index_cast %21 : i32 to index
    %c0_26 = arith.constant 0 : index
    %25 = vector.load %arg9[%24, %c0_26] : memref<64x128xf32, #tpu.memory_space<vmem>>, vector<8x128xf32>
    %cst_27 = arith.constant dense<0.000000e+00> : vector<8x128xf32>
    %26 = tpu.matmul %22, %14, %cst_27 {dimension_numbers = #tpu.dot_dimension_numbers<[1], [0], [0], [1], [0, 0, 1, 1], [], []>} : vector<8x32xf32>, vector<32x128xf32>, vector<8x128xf32> -> vector<8x128xf32>
    %27 = arith.addf %25, %26 : vector<8x128xf32>
    %28 = vector.extract_strided_slice %27 {offsets = [0, 0], sizes = [8, 32], strides = [1, 1]} : vector<8x128xf32> to vector<8x32xf32>
    %29 = arith.negf %28 : vector<8x32xf32>
    %30 = math.exp %29 : vector<8x32xf32>
    %cst_28 = arith.constant 1.000000e+00 : f32
    %31 = vector.broadcast %cst_28 : f32 to vector<8x32xf32>
    %32 = arith.addf %31, %30 : vector<8x32xf32>
    %33 = arith.divf %31, %32 : vector<8x32xf32>
    %34 = vector.extract_strided_slice %27 {offsets = [0, 32], sizes = [8, 32], strides = [1, 1]} : vector<8x128xf32> to vector<8x32xf32>
    %35 = arith.negf %34 : vector<8x32xf32>
    %36 = math.exp %35 : vector<8x32xf32>
    %cst_29 = arith.constant 1.000000e+00 : f32
    %37 = vector.broadcast %cst_29 : f32 to vector<8x32xf32>
    %38 = arith.addf %37, %36 : vector<8x32xf32>
    %39 = arith.divf %37, %38 : vector<8x32xf32>
    %40 = vector.extract_strided_slice %27 {offsets = [0, 64], sizes = [8, 32], strides = [1, 1]} : vector<8x128xf32> to vector<8x32xf32>
    %41 = math.tanh %40 : vector<8x32xf32>
    %42 = vector.extract_strided_slice %27 {offsets = [0, 96], sizes = [8, 32], strides = [1, 1]} : vector<8x128xf32> to vector<8x32xf32>
    %43 = arith.negf %42 : vector<8x32xf32>
    %44 = math.exp %43 : vector<8x32xf32>
    %cst_30 = arith.constant 1.000000e+00 : f32
    %45 = vector.broadcast %cst_30 : f32 to vector<8x32xf32>
    %46 = arith.addf %45, %44 : vector<8x32xf32>
    %47 = arith.divf %45, %46 : vector<8x32xf32>
    %48 = arith.mulf %39, %23 : vector<8x32xf32>
    %49 = arith.mulf %33, %41 : vector<8x32xf32>
    %50 = arith.addf %48, %49 : vector<8x32xf32>
    %51 = math.tanh %50 : vector<8x32xf32>
    %52 = arith.mulf %47, %51 : vector<8x32xf32>
    %53 = vector.broadcast %c0_i32_21 : i32 to vector<8x1xi32>
    %54 = arith.cmpi sgt, %15, %53 : vector<8x1xi32>
    %55 = vector.shape_cast %54 : vector<8x1xi1> to vector<8x1xi1>
    %56 = vector.broadcast %55 : vector<8x1xi1> to vector<8x32xi1>
    %57 = arith.select %56, %52, %22 : vector<8x32xi1>, vector<8x32xf32>
    %58 = vector.shape_cast %54 : vector<8x1xi1> to vector<8x1xi1>
    %59 = vector.broadcast %58 : vector<8x1xi1> to vector<8x32xi1>
    %60 = arith.select %59, %50, %23 : vector<8x32xi1>, vector<8x32xf32>
    %c0_31 = arith.constant 0 : index
    %c0_32 = arith.constant 0 : index
    %61 = vector.load %arg10[%c0_31, %c0_32] : memref<8x32xf32, #tpu.memory_space<vmem>>, vector<8x32xf32>
    tpu.vector_store %arg10[%c0_31, %c0_32], %57 {strides = array<i32>} : memref<8x32xf32, #tpu.memory_space<vmem>>, vector<8x32xf32>,
    %c0_33 = arith.constant 0 : index
    %c0_34 = arith.constant 0 : index
    %62 = vector.load %arg11[%c0_33, %c0_34] : memref<8x32xf32, #tpu.memory_space<vmem>>, vector<8x32xf32>
    tpu.vector_store %arg11[%c0_33, %c0_34], %60 {strides = array<i32>} : memref<8x32xf32, #tpu.memory_space<vmem>>, vector<8x32xf32>,
    %63 = arith.extui %0 : i1 to i32
    %c0_i32_35 = arith.constant 0 : i32
    %64 = arith.cmpi ne, %63, %c0_i32_35 : i32
    scf.if %64 {
      %388 = arith.index_cast %21 : i32 to index
      %c0_153 = arith.constant 0 : index
      %389 = vector.load %arg8[%388, %c0_153] : memref<64x32xf32, #tpu.memory_space<vmem>>, vector<8x32xf32>
      tpu.vector_store %arg8[%388, %c0_153], %57 {strides = array<i32>} : memref<64x32xf32, #tpu.memory_space<vmem>>, vector<8x32xf32>,
    } else {
    }
    %c1_i32_36 = arith.constant 1 : i32
    %c8_i32_37 = arith.constant 8 : i32
    %65 = arith.muli %c1_i32_36, %c8_i32_37 : i32
    %66 = tpu.assume_multiple %65, 8 : i32
    %c0_38 = arith.constant 0 : index
    %c0_39 = arith.constant 0 : index
    %67 = vector.load %arg10[%c0_38, %c0_39] : memref<8x32xf32, #tpu.memory_space<vmem>>, vector<8x32xf32>
    %c0_40 = arith.constant 0 : index
    %c0_41 = arith.constant 0 : index
    %68 = vector.load %arg11[%c0_40, %c0_41] : memref<8x32xf32, #tpu.memory_space<vmem>>, vector<8x32xf32>
    %69 = arith.index_cast %66 : i32 to index
    %c0_42 = arith.constant 0 : index
    %70 = vector.load %arg9[%69, %c0_42] : memref<64x128xf32, #tpu.memory_space<vmem>>, vector<8x128xf32>
    %cst_43 = arith.constant dense<0.000000e+00> : vector<8x128xf32>
    %71 = tpu.matmul %67, %14, %cst_43 {dimension_numbers = #tpu.dot_dimension_numbers<[1], [0], [0], [1], [0, 0, 1, 1], [], []>} : vector<8x32xf32>, vector<32x128xf32>, vector<8x128xf32> -> vector<8x128xf32>
    %72 = arith.addf %70, %71 : vector<8x128xf32>
    %73 = vector.extract_strided_slice %72 {offsets = [0, 0], sizes = [8, 32], strides = [1, 1]} : vector<8x128xf32> to vector<8x32xf32>
    %74 = arith.negf %73 : vector<8x32xf32>
    %75 = math.exp %74 : vector<8x32xf32>
    %cst_44 = arith.constant 1.000000e+00 : f32
    %76 = vector.broadcast %cst_44 : f32 to vector<8x32xf32>
    %77 = arith.addf %76, %75 : vector<8x32xf32>
    %78 = arith.divf %76, %77 : vector<8x32xf32>
    %79 = vector.extract_strided_slice %72 {offsets = [0, 32], sizes = [8, 32], strides = [1, 1]} : vector<8x128xf32> to vector<8x32xf32>
    %80 = arith.negf %79 : vector<8x32xf32>
    %81 = math.exp %80 : vector<8x32xf32>
    %cst_45 = arith.constant 1.000000e+00 : f32
    %82 = vector.broadcast %cst_45 : f32 to vector<8x32xf32>
    %83 = arith.addf %82, %81 : vector<8x32xf32>
    %84 = arith.divf %82, %83 : vector<8x32xf32>
    %85 = vector.extract_strided_slice %72 {offsets = [0, 64], sizes = [8, 32], strides = [1, 1]} : vector<8x128xf32> to vector<8x32xf32>
    %86 = math.tanh %85 : vector<8x32xf32>
    %87 = vector.extract_strided_slice %72 {offsets = [0, 96], sizes = [8, 32], strides = [1, 1]} : vector<8x128xf32> to vector<8x32xf32>
    %88 = arith.negf %87 : vector<8x32xf32>
    %89 = math.exp %88 : vector<8x32xf32>
    %cst_46 = arith.constant 1.000000e+00 : f32
    %90 = vector.broadcast %cst_46 : f32 to vector<8x32xf32>
    %91 = arith.addf %90, %89 : vector<8x32xf32>
    %92 = arith.divf %90, %91 : vector<8x32xf32>
    %93 = arith.mulf %84, %68 : vector<8x32xf32>
    %94 = arith.mulf %78, %86 : vector<8x32xf32>
    %95 = arith.addf %93, %94 : vector<8x32xf32>
    %96 = math.tanh %95 : vector<8x32xf32>
    %97 = arith.mulf %92, %96 : vector<8x32xf32>
    %98 = vector.broadcast %c1_i32_36 : i32 to vector<8x1xi32>
    %99 = arith.cmpi sgt, %15, %98 : vector<8x1xi32>
    %100 = vector.shape_cast %99 : vector<8x1xi1> to vector<8x1xi1>
    %101 = vector.broadcast %100 : vector<8x1xi1> to vector<8x32xi1>
    %102 = arith.select %101, %97, %67 : vector<8x32xi1>, vector<8x32xf32>
    %103 = vector.shape_cast %99 : vector<8x1xi1> to vector<8x1xi1>
    %104 = vector.broadcast %103 : vector<8x1xi1> to vector<8x32xi1>
    %105 = arith.select %104, %95, %68 : vector<8x32xi1>, vector<8x32xf32>
    %c0_47 = arith.constant 0 : index
    %c0_48 = arith.constant 0 : index
    %106 = vector.load %arg10[%c0_47, %c0_48] : memref<8x32xf32, #tpu.memory_space<vmem>>, vector<8x32xf32>
    tpu.vector_store %arg10[%c0_47, %c0_48], %102 {strides = array<i32>} : memref<8x32xf32, #tpu.memory_space<vmem>>, vector<8x32xf32>,
    %c0_49 = arith.constant 0 : index
    %c0_50 = arith.constant 0 : index
    %107 = vector.load %arg11[%c0_49, %c0_50] : memref<8x32xf32, #tpu.memory_space<vmem>>, vector<8x32xf32>
    tpu.vector_store %arg11[%c0_49, %c0_50], %105 {strides = array<i32>} : memref<8x32xf32, #tpu.memory_space<vmem>>, vector<8x32xf32>,
    %108 = arith.extui %0 : i1 to i32
    %c0_i32_51 = arith.constant 0 : i32
    %109 = arith.cmpi ne, %108, %c0_i32_51 : i32
    scf.if %109 {
      %388 = arith.index_cast %66 : i32 to index
      %c0_153 = arith.constant 0 : index
      %389 = vector.load %arg8[%388, %c0_153] : memref<64x32xf32, #tpu.memory_space<vmem>>, vector<8x32xf32>
      tpu.vector_store %arg8[%388, %c0_153], %102 {strides = array<i32>} : memref<64x32xf32, #tpu.memory_space<vmem>>, vector<8x32xf32>,
    } else {
    }
    %c2_i32 = arith.constant 2 : i32
    %c8_i32_52 = arith.constant 8 : i32
    %110 = arith.muli %c2_i32, %c8_i32_52 : i32
    %111 = tpu.assume_multiple %110, 8 : i32
    %c0_53 = arith.constant 0 : index
    %c0_54 = arith.constant 0 : index
    %112 = vector.load %arg10[%c0_53, %c0_54] : memref<8x32xf32, #tpu.memory_space<vmem>>, vector<8x32xf32>
    %c0_55 = arith.constant 0 : index
    %c0_56 = arith.constant 0 : index
    %113 = vector.load %arg11[%c0_55, %c0_56] : memref<8x32xf32, #tpu.memory_space<vmem>>, vector<8x32xf32>
    %114 = arith.index_cast %111 : i32 to index
    %c0_57 = arith.constant 0 : index
    %115 = vector.load %arg9[%114, %c0_57] : memref<64x128xf32, #tpu.memory_space<vmem>>, vector<8x128xf32>
    %cst_58 = arith.constant dense<0.000000e+00> : vector<8x128xf32>
    %116 = tpu.matmul %112, %14, %cst_58 {dimension_numbers = #tpu.dot_dimension_numbers<[1], [0], [0], [1], [0, 0, 1, 1], [], []>} : vector<8x32xf32>, vector<32x128xf32>, vector<8x128xf32> -> vector<8x128xf32>
    %117 = arith.addf %115, %116 : vector<8x128xf32>
    %118 = vector.extract_strided_slice %117 {offsets = [0, 0], sizes = [8, 32], strides = [1, 1]} : vector<8x128xf32> to vector<8x32xf32>
    %119 = arith.negf %118 : vector<8x32xf32>
    %120 = math.exp %119 : vector<8x32xf32>
    %cst_59 = arith.constant 1.000000e+00 : f32
    %121 = vector.broadcast %cst_59 : f32 to vector<8x32xf32>
    %122 = arith.addf %121, %120 : vector<8x32xf32>
    %123 = arith.divf %121, %122 : vector<8x32xf32>
    %124 = vector.extract_strided_slice %117 {offsets = [0, 32], sizes = [8, 32], strides = [1, 1]} : vector<8x128xf32> to vector<8x32xf32>
    %125 = arith.negf %124 : vector<8x32xf32>
    %126 = math.exp %125 : vector<8x32xf32>
    %cst_60 = arith.constant 1.000000e+00 : f32
    %127 = vector.broadcast %cst_60 : f32 to vector<8x32xf32>
    %128 = arith.addf %127, %126 : vector<8x32xf32>
    %129 = arith.divf %127, %128 : vector<8x32xf32>
    %130 = vector.extract_strided_slice %117 {offsets = [0, 64], sizes = [8, 32], strides = [1, 1]} : vector<8x128xf32> to vector<8x32xf32>
    %131 = math.tanh %130 : vector<8x32xf32>
    %132 = vector.extract_strided_slice %117 {offsets = [0, 96], sizes = [8, 32], strides = [1, 1]} : vector<8x128xf32> to vector<8x32xf32>
    %133 = arith.negf %132 : vector<8x32xf32>
    %134 = math.exp %133 : vector<8x32xf32>
    %cst_61 = arith.constant 1.000000e+00 : f32
    %135 = vector.broadcast %cst_61 : f32 to vector<8x32xf32>
    %136 = arith.addf %135, %134 : vector<8x32xf32>
    %137 = arith.divf %135, %136 : vector<8x32xf32>
    %138 = arith.mulf %129, %113 : vector<8x32xf32>
    %139 = arith.mulf %123, %131 : vector<8x32xf32>
    %140 = arith.addf %138, %139 : vector<8x32xf32>
    %141 = math.tanh %140 : vector<8x32xf32>
    %142 = arith.mulf %137, %141 : vector<8x32xf32>
    %143 = vector.broadcast %c2_i32 : i32 to vector<8x1xi32>
    %144 = arith.cmpi sgt, %15, %143 : vector<8x1xi32>
    %145 = vector.shape_cast %144 : vector<8x1xi1> to vector<8x1xi1>
    %146 = vector.broadcast %145 : vector<8x1xi1> to vector<8x32xi1>
    %147 = arith.select %146, %142, %112 : vector<8x32xi1>, vector<8x32xf32>
    %148 = vector.shape_cast %144 : vector<8x1xi1> to vector<8x1xi1>
    %149 = vector.broadcast %148 : vector<8x1xi1> to vector<8x32xi1>
    %150 = arith.select %149, %140, %113 : vector<8x32xi1>, vector<8x32xf32>
    %c0_62 = arith.constant 0 : index
    %c0_63 = arith.constant 0 : index
    %151 = vector.load %arg10[%c0_62, %c0_63] : memref<8x32xf32, #tpu.memory_space<vmem>>, vector<8x32xf32>
    tpu.vector_store %arg10[%c0_62, %c0_63], %147 {strides = array<i32>} : memref<8x32xf32, #tpu.memory_space<vmem>>, vector<8x32xf32>,
    %c0_64 = arith.constant 0 : index
    %c0_65 = arith.constant 0 : index
    %152 = vector.load %arg11[%c0_64, %c0_65] : memref<8x32xf32, #tpu.memory_space<vmem>>, vector<8x32xf32>
    tpu.vector_store %arg11[%c0_64, %c0_65], %150 {strides = array<i32>} : memref<8x32xf32, #tpu.memory_space<vmem>>, vector<8x32xf32>,
    %153 = arith.extui %0 : i1 to i32
    %c0_i32_66 = arith.constant 0 : i32
    %154 = arith.cmpi ne, %153, %c0_i32_66 : i32
    scf.if %154 {
      %388 = arith.index_cast %111 : i32 to index
      %c0_153 = arith.constant 0 : index
      %389 = vector.load %arg8[%388, %c0_153] : memref<64x32xf32, #tpu.memory_space<vmem>>, vector<8x32xf32>
      tpu.vector_store %arg8[%388, %c0_153], %147 {strides = array<i32>} : memref<64x32xf32, #tpu.memory_space<vmem>>, vector<8x32xf32>,
    } else {
    }
    %c3_i32 = arith.constant 3 : i32
    %c8_i32_67 = arith.constant 8 : i32
    %155 = arith.muli %c3_i32, %c8_i32_67 : i32
    %156 = tpu.assume_multiple %155, 8 : i32
    %c0_68 = arith.constant 0 : index
    %c0_69 = arith.constant 0 : index
    %157 = vector.load %arg10[%c0_68, %c0_69] : memref<8x32xf32, #tpu.memory_space<vmem>>, vector<8x32xf32>
    %c0_70 = arith.constant 0 : index
    %c0_71 = arith.constant 0 : index
    %158 = vector.load %arg11[%c0_70, %c0_71] : memref<8x32xf32, #tpu.memory_space<vmem>>, vector<8x32xf32>
    %159 = arith.index_cast %156 : i32 to index
    %c0_72 = arith.constant 0 : index
    %160 = vector.load %arg9[%159, %c0_72] : memref<64x128xf32, #tpu.memory_space<vmem>>, vector<8x128xf32>
    %cst_73 = arith.constant dense<0.000000e+00> : vector<8x128xf32>
    %161 = tpu.matmul %157, %14, %cst_73 {dimension_numbers = #tpu.dot_dimension_numbers<[1], [0], [0], [1], [0, 0, 1, 1], [], []>} : vector<8x32xf32>, vector<32x128xf32>, vector<8x128xf32> -> vector<8x128xf32>
    %162 = arith.addf %160, %161 : vector<8x128xf32>
    %163 = vector.extract_strided_slice %162 {offsets = [0, 0], sizes = [8, 32], strides = [1, 1]} : vector<8x128xf32> to vector<8x32xf32>
    %164 = arith.negf %163 : vector<8x32xf32>
    %165 = math.exp %164 : vector<8x32xf32>
    %cst_74 = arith.constant 1.000000e+00 : f32
    %166 = vector.broadcast %cst_74 : f32 to vector<8x32xf32>
    %167 = arith.addf %166, %165 : vector<8x32xf32>
    %168 = arith.divf %166, %167 : vector<8x32xf32>
    %169 = vector.extract_strided_slice %162 {offsets = [0, 32], sizes = [8, 32], strides = [1, 1]} : vector<8x128xf32> to vector<8x32xf32>
    %170 = arith.negf %169 : vector<8x32xf32>
    %171 = math.exp %170 : vector<8x32xf32>
    %cst_75 = arith.constant 1.000000e+00 : f32
    %172 = vector.broadcast %cst_75 : f32 to vector<8x32xf32>
    %173 = arith.addf %172, %171 : vector<8x32xf32>
    %174 = arith.divf %172, %173 : vector<8x32xf32>
    %175 = vector.extract_strided_slice %162 {offsets = [0, 64], sizes = [8, 32], strides = [1, 1]} : vector<8x128xf32> to vector<8x32xf32>
    %176 = math.tanh %175 : vector<8x32xf32>
    %177 = vector.extract_strided_slice %162 {offsets = [0, 96], sizes = [8, 32], strides = [1, 1]} : vector<8x128xf32> to vector<8x32xf32>
    %178 = arith.negf %177 : vector<8x32xf32>
    %179 = math.exp %178 : vector<8x32xf32>
    %cst_76 = arith.constant 1.000000e+00 : f32
    %180 = vector.broadcast %cst_76 : f32 to vector<8x32xf32>
    %181 = arith.addf %180, %179 : vector<8x32xf32>
    %182 = arith.divf %180, %181 : vector<8x32xf32>
    %183 = arith.mulf %174, %158 : vector<8x32xf32>
    %184 = arith.mulf %168, %176 : vector<8x32xf32>
    %185 = arith.addf %183, %184 : vector<8x32xf32>
    %186 = math.tanh %185 : vector<8x32xf32>
    %187 = arith.mulf %182, %186 : vector<8x32xf32>
    %188 = vector.broadcast %c3_i32 : i32 to vector<8x1xi32>
    %189 = arith.cmpi sgt, %15, %188 : vector<8x1xi32>
    %190 = vector.shape_cast %189 : vector<8x1xi1> to vector<8x1xi1>
    %191 = vector.broadcast %190 : vector<8x1xi1> to vector<8x32xi1>
    %192 = arith.select %191, %187, %157 : vector<8x32xi1>, vector<8x32xf32>
    %193 = vector.shape_cast %189 : vector<8x1xi1> to vector<8x1xi1>
    %194 = vector.broadcast %193 : vector<8x1xi1> to vector<8x32xi1>
    %195 = arith.select %194, %185, %158 : vector<8x32xi1>, vector<8x32xf32>
    %c0_77 = arith.constant 0 : index
    %c0_78 = arith.constant 0 : index
    %196 = vector.load %arg10[%c0_77, %c0_78] : memref<8x32xf32, #tpu.memory_space<vmem>>, vector<8x32xf32>
    tpu.vector_store %arg10[%c0_77, %c0_78], %192 {strides = array<i32>} : memref<8x32xf32, #tpu.memory_space<vmem>>, vector<8x32xf32>,
    %c0_79 = arith.constant 0 : index
    %c0_80 = arith.constant 0 : index
    %197 = vector.load %arg11[%c0_79, %c0_80] : memref<8x32xf32, #tpu.memory_space<vmem>>, vector<8x32xf32>
    tpu.vector_store %arg11[%c0_79, %c0_80], %195 {strides = array<i32>} : memref<8x32xf32, #tpu.memory_space<vmem>>, vector<8x32xf32>,
    %198 = arith.extui %0 : i1 to i32
    %c0_i32_81 = arith.constant 0 : i32
    %199 = arith.cmpi ne, %198, %c0_i32_81 : i32
    scf.if %199 {
      %388 = arith.index_cast %156 : i32 to index
      %c0_153 = arith.constant 0 : index
      %389 = vector.load %arg8[%388, %c0_153] : memref<64x32xf32, #tpu.memory_space<vmem>>, vector<8x32xf32>
      tpu.vector_store %arg8[%388, %c0_153], %192 {strides = array<i32>} : memref<64x32xf32, #tpu.memory_space<vmem>>, vector<8x32xf32>,
    } else {
    }
    %c4_i32 = arith.constant 4 : i32
    %c8_i32_82 = arith.constant 8 : i32
    %200 = arith.muli %c4_i32, %c8_i32_82 : i32
    %201 = tpu.assume_multiple %200, 8 : i32
    %c0_83 = arith.constant 0 : index
    %c0_84 = arith.constant 0 : index
    %202 = vector.load %arg10[%c0_83, %c0_84] : memref<8x32xf32, #tpu.memory_space<vmem>>, vector<8x32xf32>
    %c0_85 = arith.constant 0 : index
    %c0_86 = arith.constant 0 : index
    %203 = vector.load %arg11[%c0_85, %c0_86] : memref<8x32xf32, #tpu.memory_space<vmem>>, vector<8x32xf32>
    %204 = arith.index_cast %201 : i32 to index
    %c0_87 = arith.constant 0 : index
    %205 = vector.load %arg9[%204, %c0_87] : memref<64x128xf32, #tpu.memory_space<vmem>>, vector<8x128xf32>
    %cst_88 = arith.constant dense<0.000000e+00> : vector<8x128xf32>
    %206 = tpu.matmul %202, %14, %cst_88 {dimension_numbers = #tpu.dot_dimension_numbers<[1], [0], [0], [1], [0, 0, 1, 1], [], []>} : vector<8x32xf32>, vector<32x128xf32>, vector<8x128xf32> -> vector<8x128xf32>
    %207 = arith.addf %205, %206 : vector<8x128xf32>
    %208 = vector.extract_strided_slice %207 {offsets = [0, 0], sizes = [8, 32], strides = [1, 1]} : vector<8x128xf32> to vector<8x32xf32>
    %209 = arith.negf %208 : vector<8x32xf32>
    %210 = math.exp %209 : vector<8x32xf32>
    %cst_89 = arith.constant 1.000000e+00 : f32
    %211 = vector.broadcast %cst_89 : f32 to vector<8x32xf32>
    %212 = arith.addf %211, %210 : vector<8x32xf32>
    %213 = arith.divf %211, %212 : vector<8x32xf32>
    %214 = vector.extract_strided_slice %207 {offsets = [0, 32], sizes = [8, 32], strides = [1, 1]} : vector<8x128xf32> to vector<8x32xf32>
    %215 = arith.negf %214 : vector<8x32xf32>
    %216 = math.exp %215 : vector<8x32xf32>
    %cst_90 = arith.constant 1.000000e+00 : f32
    %217 = vector.broadcast %cst_90 : f32 to vector<8x32xf32>
    %218 = arith.addf %217, %216 : vector<8x32xf32>
    %219 = arith.divf %217, %218 : vector<8x32xf32>
    %220 = vector.extract_strided_slice %207 {offsets = [0, 64], sizes = [8, 32], strides = [1, 1]} : vector<8x128xf32> to vector<8x32xf32>
    %221 = math.tanh %220 : vector<8x32xf32>
    %222 = vector.extract_strided_slice %207 {offsets = [0, 96], sizes = [8, 32], strides = [1, 1]} : vector<8x128xf32> to vector<8x32xf32>
    %223 = arith.negf %222 : vector<8x32xf32>
    %224 = math.exp %223 : vector<8x32xf32>
    %cst_91 = arith.constant 1.000000e+00 : f32
    %225 = vector.broadcast %cst_91 : f32 to vector<8x32xf32>
    %226 = arith.addf %225, %224 : vector<8x32xf32>
    %227 = arith.divf %225, %226 : vector<8x32xf32>
    %228 = arith.mulf %219, %203 : vector<8x32xf32>
    %229 = arith.mulf %213, %221 : vector<8x32xf32>
    %230 = arith.addf %228, %229 : vector<8x32xf32>
    %231 = math.tanh %230 : vector<8x32xf32>
    %232 = arith.mulf %227, %231 : vector<8x32xf32>
    %233 = vector.broadcast %c4_i32 : i32 to vector<8x1xi32>
    %234 = arith.cmpi sgt, %15, %233 : vector<8x1xi32>
    %235 = vector.shape_cast %234 : vector<8x1xi1> to vector<8x1xi1>
    %236 = vector.broadcast %235 : vector<8x1xi1> to vector<8x32xi1>
    %237 = arith.select %236, %232, %202 : vector<8x32xi1>, vector<8x32xf32>
    %238 = vector.shape_cast %234 : vector<8x1xi1> to vector<8x1xi1>
    %239 = vector.broadcast %238 : vector<8x1xi1> to vector<8x32xi1>
    %240 = arith.select %239, %230, %203 : vector<8x32xi1>, vector<8x32xf32>
    %c0_92 = arith.constant 0 : index
    %c0_93 = arith.constant 0 : index
    %241 = vector.load %arg10[%c0_92, %c0_93] : memref<8x32xf32, #tpu.memory_space<vmem>>, vector<8x32xf32>
    tpu.vector_store %arg10[%c0_92, %c0_93], %237 {strides = array<i32>} : memref<8x32xf32, #tpu.memory_space<vmem>>, vector<8x32xf32>,
    %c0_94 = arith.constant 0 : index
    %c0_95 = arith.constant 0 : index
    %242 = vector.load %arg11[%c0_94, %c0_95] : memref<8x32xf32, #tpu.memory_space<vmem>>, vector<8x32xf32>
    tpu.vector_store %arg11[%c0_94, %c0_95], %240 {strides = array<i32>} : memref<8x32xf32, #tpu.memory_space<vmem>>, vector<8x32xf32>,
    %243 = arith.extui %0 : i1 to i32
    %c0_i32_96 = arith.constant 0 : i32
    %244 = arith.cmpi ne, %243, %c0_i32_96 : i32
    scf.if %244 {
      %388 = arith.index_cast %201 : i32 to index
      %c0_153 = arith.constant 0 : index
      %389 = vector.load %arg8[%388, %c0_153] : memref<64x32xf32, #tpu.memory_space<vmem>>, vector<8x32xf32>
      tpu.vector_store %arg8[%388, %c0_153], %237 {strides = array<i32>} : memref<64x32xf32, #tpu.memory_space<vmem>>, vector<8x32xf32>,
    } else {
    }
    %c5_i32 = arith.constant 5 : i32
    %c8_i32_97 = arith.constant 8 : i32
    %245 = arith.muli %c5_i32, %c8_i32_97 : i32
    %246 = tpu.assume_multiple %245, 8 : i32
    %c0_98 = arith.constant 0 : index
    %c0_99 = arith.constant 0 : index
    %247 = vector.load %arg10[%c0_98, %c0_99] : memref<8x32xf32, #tpu.memory_space<vmem>>, vector<8x32xf32>
    %c0_100 = arith.constant 0 : index
    %c0_101 = arith.constant 0 : index
    %248 = vector.load %arg11[%c0_100, %c0_101] : memref<8x32xf32, #tpu.memory_space<vmem>>, vector<8x32xf32>
    %249 = arith.index_cast %246 : i32 to index
    %c0_102 = arith.constant 0 : index
    %250 = vector.load %arg9[%249, %c0_102] : memref<64x128xf32, #tpu.memory_space<vmem>>, vector<8x128xf32>
    %cst_103 = arith.constant dense<0.000000e+00> : vector<8x128xf32>
    %251 = tpu.matmul %247, %14, %cst_103 {dimension_numbers = #tpu.dot_dimension_numbers<[1], [0], [0], [1], [0, 0, 1, 1], [], []>} : vector<8x32xf32>, vector<32x128xf32>, vector<8x128xf32> -> vector<8x128xf32>
    %252 = arith.addf %250, %251 : vector<8x128xf32>
    %253 = vector.extract_strided_slice %252 {offsets = [0, 0], sizes = [8, 32], strides = [1, 1]} : vector<8x128xf32> to vector<8x32xf32>
    %254 = arith.negf %253 : vector<8x32xf32>
    %255 = math.exp %254 : vector<8x32xf32>
    %cst_104 = arith.constant 1.000000e+00 : f32
    %256 = vector.broadcast %cst_104 : f32 to vector<8x32xf32>
    %257 = arith.addf %256, %255 : vector<8x32xf32>
    %258 = arith.divf %256, %257 : vector<8x32xf32>
    %259 = vector.extract_strided_slice %252 {offsets = [0, 32], sizes = [8, 32], strides = [1, 1]} : vector<8x128xf32> to vector<8x32xf32>
    %260 = arith.negf %259 : vector<8x32xf32>
    %261 = math.exp %260 : vector<8x32xf32>
    %cst_105 = arith.constant 1.000000e+00 : f32
    %262 = vector.broadcast %cst_105 : f32 to vector<8x32xf32>
    %263 = arith.addf %262, %261 : vector<8x32xf32>
    %264 = arith.divf %262, %263 : vector<8x32xf32>
    %265 = vector.extract_strided_slice %252 {offsets = [0, 64], sizes = [8, 32], strides = [1, 1]} : vector<8x128xf32> to vector<8x32xf32>
    %266 = math.tanh %265 : vector<8x32xf32>
    %267 = vector.extract_strided_slice %252 {offsets = [0, 96], sizes = [8, 32], strides = [1, 1]} : vector<8x128xf32> to vector<8x32xf32>
    %268 = arith.negf %267 : vector<8x32xf32>
    %269 = math.exp %268 : vector<8x32xf32>
    %cst_106 = arith.constant 1.000000e+00 : f32
    %270 = vector.broadcast %cst_106 : f32 to vector<8x32xf32>
    %271 = arith.addf %270, %269 : vector<8x32xf32>
    %272 = arith.divf %270, %271 : vector<8x32xf32>
    %273 = arith.mulf %264, %248 : vector<8x32xf32>
    %274 = arith.mulf %258, %266 : vector<8x32xf32>
    %275 = arith.addf %273, %274 : vector<8x32xf32>
    %276 = math.tanh %275 : vector<8x32xf32>
    %277 = arith.mulf %272, %276 : vector<8x32xf32>
    %278 = vector.broadcast %c5_i32 : i32 to vector<8x1xi32>
    %279 = arith.cmpi sgt, %15, %278 : vector<8x1xi32>
    %280 = vector.shape_cast %279 : vector<8x1xi1> to vector<8x1xi1>
    %281 = vector.broadcast %280 : vector<8x1xi1> to vector<8x32xi1>
    %282 = arith.select %281, %277, %247 : vector<8x32xi1>, vector<8x32xf32>
    %283 = vector.shape_cast %279 : vector<8x1xi1> to vector<8x1xi1>
    %284 = vector.broadcast %283 : vector<8x1xi1> to vector<8x32xi1>
    %285 = arith.select %284, %275, %248 : vector<8x32xi1>, vector<8x32xf32>
    %c0_107 = arith.constant 0 : index
    %c0_108 = arith.constant 0 : index
    %286 = vector.load %arg10[%c0_107, %c0_108] : memref<8x32xf32, #tpu.memory_space<vmem>>, vector<8x32xf32>
    tpu.vector_store %arg10[%c0_107, %c0_108], %282 {strides = array<i32>} : memref<8x32xf32, #tpu.memory_space<vmem>>, vector<8x32xf32>,
    %c0_109 = arith.constant 0 : index
    %c0_110 = arith.constant 0 : index
    %287 = vector.load %arg11[%c0_109, %c0_110] : memref<8x32xf32, #tpu.memory_space<vmem>>, vector<8x32xf32>
    tpu.vector_store %arg11[%c0_109, %c0_110], %285 {strides = array<i32>} : memref<8x32xf32, #tpu.memory_space<vmem>>, vector<8x32xf32>,
    %288 = arith.extui %0 : i1 to i32
    %c0_i32_111 = arith.constant 0 : i32
    %289 = arith.cmpi ne, %288, %c0_i32_111 : i32
    scf.if %289 {
      %388 = arith.index_cast %246 : i32 to index
      %c0_153 = arith.constant 0 : index
      %389 = vector.load %arg8[%388, %c0_153] : memref<64x32xf32, #tpu.memory_space<vmem>>, vector<8x32xf32>
      tpu.vector_store %arg8[%388, %c0_153], %282 {strides = array<i32>} : memref<64x32xf32, #tpu.memory_space<vmem>>, vector<8x32xf32>,
    } else {
    }
    %c6_i32 = arith.constant 6 : i32
    %c8_i32_112 = arith.constant 8 : i32
    %290 = arith.muli %c6_i32, %c8_i32_112 : i32
    %291 = tpu.assume_multiple %290, 8 : i32
    %c0_113 = arith.constant 0 : index
    %c0_114 = arith.constant 0 : index
    %292 = vector.load %arg10[%c0_113, %c0_114] : memref<8x32xf32, #tpu.memory_space<vmem>>, vector<8x32xf32>
    %c0_115 = arith.constant 0 : index
    %c0_116 = arith.constant 0 : index
    %293 = vector.load %arg11[%c0_115, %c0_116] : memref<8x32xf32, #tpu.memory_space<vmem>>, vector<8x32xf32>
    %294 = arith.index_cast %291 : i32 to index
    %c0_117 = arith.constant 0 : index
    %295 = vector.load %arg9[%294, %c0_117] : memref<64x128xf32, #tpu.memory_space<vmem>>, vector<8x128xf32>
    %cst_118 = arith.constant dense<0.000000e+00> : vector<8x128xf32>
    %296 = tpu.matmul %292, %14, %cst_118 {dimension_numbers = #tpu.dot_dimension_numbers<[1], [0], [0], [1], [0, 0, 1, 1], [], []>} : vector<8x32xf32>, vector<32x128xf32>, vector<8x128xf32> -> vector<8x128xf32>
    %297 = arith.addf %295, %296 : vector<8x128xf32>
    %298 = vector.extract_strided_slice %297 {offsets = [0, 0], sizes = [8, 32], strides = [1, 1]} : vector<8x128xf32> to vector<8x32xf32>
    %299 = arith.negf %298 : vector<8x32xf32>
    %300 = math.exp %299 : vector<8x32xf32>
    %cst_119 = arith.constant 1.000000e+00 : f32
    %301 = vector.broadcast %cst_119 : f32 to vector<8x32xf32>
    %302 = arith.addf %301, %300 : vector<8x32xf32>
    %303 = arith.divf %301, %302 : vector<8x32xf32>
    %304 = vector.extract_strided_slice %297 {offsets = [0, 32], sizes = [8, 32], strides = [1, 1]} : vector<8x128xf32> to vector<8x32xf32>
    %305 = arith.negf %304 : vector<8x32xf32>
    %306 = math.exp %305 : vector<8x32xf32>
    %cst_120 = arith.constant 1.000000e+00 : f32
    %307 = vector.broadcast %cst_120 : f32 to vector<8x32xf32>
    %308 = arith.addf %307, %306 : vector<8x32xf32>
    %309 = arith.divf %307, %308 : vector<8x32xf32>
    %310 = vector.extract_strided_slice %297 {offsets = [0, 64], sizes = [8, 32], strides = [1, 1]} : vector<8x128xf32> to vector<8x32xf32>
    %311 = math.tanh %310 : vector<8x32xf32>
    %312 = vector.extract_strided_slice %297 {offsets = [0, 96], sizes = [8, 32], strides = [1, 1]} : vector<8x128xf32> to vector<8x32xf32>
    %313 = arith.negf %312 : vector<8x32xf32>
    %314 = math.exp %313 : vector<8x32xf32>
    %cst_121 = arith.constant 1.000000e+00 : f32
    %315 = vector.broadcast %cst_121 : f32 to vector<8x32xf32>
    %316 = arith.addf %315, %314 : vector<8x32xf32>
    %317 = arith.divf %315, %316 : vector<8x32xf32>
    %318 = arith.mulf %309, %293 : vector<8x32xf32>
    %319 = arith.mulf %303, %311 : vector<8x32xf32>
    %320 = arith.addf %318, %319 : vector<8x32xf32>
    %321 = math.tanh %320 : vector<8x32xf32>
    %322 = arith.mulf %317, %321 : vector<8x32xf32>
    %323 = vector.broadcast %c6_i32 : i32 to vector<8x1xi32>
    %324 = arith.cmpi sgt, %15, %323 : vector<8x1xi32>
    %325 = vector.shape_cast %324 : vector<8x1xi1> to vector<8x1xi1>
    %326 = vector.broadcast %325 : vector<8x1xi1> to vector<8x32xi1>
    %327 = arith.select %326, %322, %292 : vector<8x32xi1>, vector<8x32xf32>
    %328 = vector.shape_cast %324 : vector<8x1xi1> to vector<8x1xi1>
    %329 = vector.broadcast %328 : vector<8x1xi1> to vector<8x32xi1>
    %330 = arith.select %329, %320, %293 : vector<8x32xi1>, vector<8x32xf32>
    %c0_122 = arith.constant 0 : index
    %c0_123 = arith.constant 0 : index
    %331 = vector.load %arg10[%c0_122, %c0_123] : memref<8x32xf32, #tpu.memory_space<vmem>>, vector<8x32xf32>
    tpu.vector_store %arg10[%c0_122, %c0_123], %327 {strides = array<i32>} : memref<8x32xf32, #tpu.memory_space<vmem>>, vector<8x32xf32>,
    %c0_124 = arith.constant 0 : index
    %c0_125 = arith.constant 0 : index
    %332 = vector.load %arg11[%c0_124, %c0_125] : memref<8x32xf32, #tpu.memory_space<vmem>>, vector<8x32xf32>
    tpu.vector_store %arg11[%c0_124, %c0_125], %330 {strides = array<i32>} : memref<8x32xf32, #tpu.memory_space<vmem>>, vector<8x32xf32>,
    %333 = arith.extui %0 : i1 to i32
    %c0_i32_126 = arith.constant 0 : i32
    %334 = arith.cmpi ne, %333, %c0_i32_126 : i32
    scf.if %334 {
      %388 = arith.index_cast %291 : i32 to index
      %c0_153 = arith.constant 0 : index
      %389 = vector.load %arg8[%388, %c0_153] : memref<64x32xf32, #tpu.memory_space<vmem>>, vector<8x32xf32>
      tpu.vector_store %arg8[%388, %c0_153], %327 {strides = array<i32>} : memref<64x32xf32, #tpu.memory_space<vmem>>, vector<8x32xf32>,
    } else {
    }
    %c7_i32 = arith.constant 7 : i32
    %c8_i32_127 = arith.constant 8 : i32
    %335 = arith.muli %c7_i32, %c8_i32_127 : i32
    %336 = tpu.assume_multiple %335, 8 : i32
    %c0_128 = arith.constant 0 : index
    %c0_129 = arith.constant 0 : index
    %337 = vector.load %arg10[%c0_128, %c0_129] : memref<8x32xf32, #tpu.memory_space<vmem>>, vector<8x32xf32>
    %c0_130 = arith.constant 0 : index
    %c0_131 = arith.constant 0 : index
    %338 = vector.load %arg11[%c0_130, %c0_131] : memref<8x32xf32, #tpu.memory_space<vmem>>, vector<8x32xf32>
    %339 = arith.index_cast %336 : i32 to index
    %c0_132 = arith.constant 0 : index
    %340 = vector.load %arg9[%339, %c0_132] : memref<64x128xf32, #tpu.memory_space<vmem>>, vector<8x128xf32>
    %cst_133 = arith.constant dense<0.000000e+00> : vector<8x128xf32>
    %341 = tpu.matmul %337, %14, %cst_133 {dimension_numbers = #tpu.dot_dimension_numbers<[1], [0], [0], [1], [0, 0, 1, 1], [], []>} : vector<8x32xf32>, vector<32x128xf32>, vector<8x128xf32> -> vector<8x128xf32>
    %342 = arith.addf %340, %341 : vector<8x128xf32>
    %343 = vector.extract_strided_slice %342 {offsets = [0, 0], sizes = [8, 32], strides = [1, 1]} : vector<8x128xf32> to vector<8x32xf32>
    %344 = arith.negf %343 : vector<8x32xf32>
    %345 = math.exp %344 : vector<8x32xf32>
    %cst_134 = arith.constant 1.000000e+00 : f32
    %346 = vector.broadcast %cst_134 : f32 to vector<8x32xf32>
    %347 = arith.addf %346, %345 : vector<8x32xf32>
    %348 = arith.divf %346, %347 : vector<8x32xf32>
    %349 = vector.extract_strided_slice %342 {offsets = [0, 32], sizes = [8, 32], strides = [1, 1]} : vector<8x128xf32> to vector<8x32xf32>
    %350 = arith.negf %349 : vector<8x32xf32>
    %351 = math.exp %350 : vector<8x32xf32>
    %cst_135 = arith.constant 1.000000e+00 : f32
    %352 = vector.broadcast %cst_135 : f32 to vector<8x32xf32>
    %353 = arith.addf %352, %351 : vector<8x32xf32>
    %354 = arith.divf %352, %353 : vector<8x32xf32>
    %355 = vector.extract_strided_slice %342 {offsets = [0, 64], sizes = [8, 32], strides = [1, 1]} : vector<8x128xf32> to vector<8x32xf32>
    %356 = math.tanh %355 : vector<8x32xf32>
    %357 = vector.extract_strided_slice %342 {offsets = [0, 96], sizes = [8, 32], strides = [1, 1]} : vector<8x128xf32> to vector<8x32xf32>
    %358 = arith.negf %357 : vector<8x32xf32>
    %359 = math.exp %358 : vector<8x32xf32>
    %cst_136 = arith.constant 1.000000e+00 : f32
    %360 = vector.broadcast %cst_136 : f32 to vector<8x32xf32>
    %361 = arith.addf %360, %359 : vector<8x32xf32>
    %362 = arith.divf %360, %361 : vector<8x32xf32>
    %363 = arith.mulf %354, %338 : vector<8x32xf32>
    %364 = arith.mulf %348, %356 : vector<8x32xf32>
    %365 = arith.addf %363, %364 : vector<8x32xf32>
    %366 = math.tanh %365 : vector<8x32xf32>
    %367 = arith.mulf %362, %366 : vector<8x32xf32>
    %368 = vector.broadcast %c7_i32 : i32 to vector<8x1xi32>
    %369 = arith.cmpi sgt, %15, %368 : vector<8x1xi32>
    %370 = vector.shape_cast %369 : vector<8x1xi1> to vector<8x1xi1>
    %371 = vector.broadcast %370 : vector<8x1xi1> to vector<8x32xi1>
    %372 = arith.select %371, %367, %337 : vector<8x32xi1>, vector<8x32xf32>
    %373 = vector.shape_cast %369 : vector<8x1xi1> to vector<8x1xi1>
    %374 = vector.broadcast %373 : vector<8x1xi1> to vector<8x32xi1>
    %375 = arith.select %374, %365, %338 : vector<8x32xi1>, vector<8x32xf32>
    %c0_137 = arith.constant 0 : index
    %c0_138 = arith.constant 0 : index
    %376 = vector.load %arg10[%c0_137, %c0_138] : memref<8x32xf32, #tpu.memory_space<vmem>>, vector<8x32xf32>
    tpu.vector_store %arg10[%c0_137, %c0_138], %372 {strides = array<i32>} : memref<8x32xf32, #tpu.memory_space<vmem>>, vector<8x32xf32>,
    %c0_139 = arith.constant 0 : index
    %c0_140 = arith.constant 0 : index
    %377 = vector.load %arg11[%c0_139, %c0_140] : memref<8x32xf32, #tpu.memory_space<vmem>>, vector<8x32xf32>
    tpu.vector_store %arg11[%c0_139, %c0_140], %375 {strides = array<i32>} : memref<8x32xf32, #tpu.memory_space<vmem>>, vector<8x32xf32>,
    %378 = arith.extui %0 : i1 to i32
    %c0_i32_141 = arith.constant 0 : i32
    %379 = arith.cmpi ne, %378, %c0_i32_141 : i32
    scf.if %379 {
      %388 = arith.index_cast %336 : i32 to index
      %c0_153 = arith.constant 0 : index
      %389 = vector.load %arg8[%388, %c0_153] : memref<64x32xf32, #tpu.memory_space<vmem>>, vector<8x32xf32>
      tpu.vector_store %arg8[%388, %c0_153], %372 {strides = array<i32>} : memref<64x32xf32, #tpu.memory_space<vmem>>, vector<8x32xf32>,
    } else {
    }
    %c8_i32_142 = arith.constant 8 : i32
    %c0_143 = arith.constant 0 : index
    %c0_144 = arith.constant 0 : index
    %380 = vector.load %arg10[%c0_143, %c0_144] : memref<8x32xf32, #tpu.memory_space<vmem>>, vector<8x32xf32>
    %c0_145 = arith.constant 0 : index
    %c0_146 = arith.constant 0 : index
    %c0_147 = arith.constant 0 : index
    %381 = vector.load %arg6[%c0_145, %c0_146, %c0_147] : memref<1x8x32xf32, #tpu.memory_space<vmem>>, vector<1x8x32xf32>
    %382 = vector.shape_cast %381 : vector<1x8x32xf32> to vector<8x32xf32>
    %383 = vector.shape_cast %380 : vector<8x32xf32> to vector<1x8x32xf32>
    tpu.vector_store %arg6[%c0_145, %c0_146, %c0_147], %383 {strides = array<i32>} : memref<1x8x32xf32, #tpu.memory_space<vmem>>, vector<1x8x32xf32>,
    %c0_148 = arith.constant 0 : index
    %c0_149 = arith.constant 0 : index
    %384 = vector.load %arg11[%c0_148, %c0_149] : memref<8x32xf32, #tpu.memory_space<vmem>>, vector<8x32xf32>
    %c0_150 = arith.constant 0 : index
    %c0_151 = arith.constant 0 : index
    %c0_152 = arith.constant 0 : index
    %385 = vector.load %arg7[%c0_150, %c0_151, %c0_152] : memref<1x8x32xf32, #tpu.memory_space<vmem>>, vector<1x8x32xf32>
    %386 = vector.shape_cast %385 : vector<1x8x32xf32> to vector<8x32xf32>
    %387 = vector.shape_cast %384 : vector<8x32xf32> to vector<1x8x32xf32>
    tpu.vector_store %arg7[%c0_150, %c0_151, %c0_152], %387 {strides = array<i32>} : memref<1x8x32xf32, #tpu.memory_space<vmem>>, vector<1x8x32xf32>,
    return
  }
  func.func @transform_0(%arg0: i32) -> (i32, i32) {
    %c0_i32 = arith.constant 0 : i32
    %c0_i32_0 = arith.constant 0 : i32
    %c0_i32_1 = arith.constant 0 : i32
    return %c0_i32, %c0_i32_0 : i32, i32
  }
  func.func @transform_1(%arg0: i32) -> (i32, i32) {
    %c0_i32 = arith.constant 0 : i32
    %c0_i32_0 = arith.constant 0 : i32
    %c0_i32_1 = arith.constant 0 : i32
    return %c0_i32, %c0_i32_0 : i32, i32
  }
  func.func @transform_2(%arg0: i32) -> (i32, i32, i32) {
    %c0_i32 = arith.constant 0 : i32
    %c0_i32_0 = arith.constant 0 : i32
    %c0_i32_1 = arith.constant 0 : i32
    return %arg0, %c0_i32, %c0_i32_0 : i32, i32, i32
  }
  func.func @transform_3(%arg0: i32) -> (i32, i32, i32) {
    %c0_i32 = arith.constant 0 : i32
    %c0_i32_0 = arith.constant 0 : i32
    %c0_i32_1 = arith.constant 0 : i32
    return %arg0, %c0_i32, %c0_i32_0 : i32, i32, i32
  }
  func.func @transform_4(%arg0: i32) -> (i32, i32, i32) {
    %c0_i32 = arith.constant 0 : i32
    %c0_i32_0 = arith.constant 0 : i32
    %c0_i32_1 = arith.constant 0 : i32
    return %arg0, %c0_i32, %c0_i32_0 : i32, i32, i32
  }
  func.func @transform_5(%arg0: i32) -> (i32, i32, i32) {
    %c0_i32 = arith.constant 0 : i32
    %c0_i32_0 = arith.constant 0 : i32
    %c0_i32_1 = arith.constant 0 : i32
    return %arg0, %c0_i32, %c0_i32_0 : i32, i32, i32
  }
  func.func @transform_6(%arg0: i32) -> (i32, i32, i32) {
    %c0_i32 = arith.constant 0 : i32
    %c0_i32_0 = arith.constant 0 : i32
    %c0_i32_1 = arith.constant 0 : i32
    return %arg0, %c0_i32, %c0_i32_0 : i32, i32, i32
  }
}

</mosaic_0001>

<bundles_post_ra>
// kernel: tpu_custom_call.1
= control target key start
LH: loop header
LB: loop body
LE: loop exit
PB: predicated region body
PF: predicated region fallthrough
CT: control target
= control target key end

     0   :  { %s2760_s0 = inlined_call_operand.vmem [shape: f32[64,32], index: 0, kind: input, shape index: {}]   ;;  %s2761_s1 = inlined_call_operand.vmem [shape: s32[8,1], index: 1, kind: input, shape index: {}]   ;;  %s2762_s2 = inlined_call_operand.vmem [shape: f32[2,32,128], index: 2, kind: input, shape index: {}]   ;;  %s2763_s3 = inlined_call_operand.hbm [shape: f32[2,32,128], index: 3, kind: input, shape index: {}]   ;;  %s2764_s4 = inlined_call_operand.vmem [shape: f32[2,1,128], index: 4, kind: input, shape index: {}]   ;;  %s2765_s5 = inlined_call_operand.hbm [shape: f32[2,8,32], index: 5, kind: output, shape index: {0}]   ;;  %s2766_s6 = inlined_call_operand.hbm [shape: f32[2,8,32], index: 6, kind: output, shape index: {1}]  }
   0x1   :  { %2769 = sst [smem:[#allocation16_spill]] %s2763_s3 }
   0x2   :  { %12 = vsyncpa [#allocation7], 0 }
   0x3   :  { %14 = vsyncpa [#allocation7 + $0x1], 0 }
   0x4   :  { %15 = vsyncpa [#allocation8], 0 }
   0x5   :  { %17 = vsyncpa [#allocation8 + $0x1], 0 }
   0x6   :  { %18 = vsyncpa [#allocation11], 0 }
   0x7   :  { %20 = vsyncpa [#allocation11 + $0x1], 0  ;;  %s2301_s21 = smov 0   ;;  %s2303_s22 = smov 0  }
   0x8   :  { %s2305_s23 = smov 0   ;;  %s2307_s24 = smov 0  }
   0x9 LB: > { %s2322_s25 = sadd.s32 4294967295, %s2252_s24   ;;  %s1714_s26 = sadd.s32 4294967294, %s2252_s24   ;;  %s2252_s24 = sphi %s2307_s24, %s2792_s24   ;;  %s2248_s23 = sphi %s2305_s23, %s2791_s23   ;;  %s2244_s22 = sphi %s2303_s22, %s2790_s22   ;;  %s2240_s21 = sphi %s2301_s21, %s2789_s21  }
   0xa   : > { %s2326_s27 = sadd.s32 1, %s2252_s24   ;;  %s101_s28 = sadd.s32 1, %s2248_s23 }
   0xb   : > { %s98_s29 = ssub.s32 %s2252_s24, %s2326_s27  ;;  %p108_p0 = scmp.ne.s32.totalorder %s2248_s23, %s2244_s22 }
   0xc   : > { %p99_p1 = scmp.eq.s32.totalorder %s98_s29, 0  ;;  %p109_p2 = scmp.eq.s32.totalorder %s2252_s24, 0 }
   0xd   : > { %p114_p3 = scmp.ne.s32.totalorder %s2244_s22, %s2240_s21  ;;  %p115_p4 = scmp.eq.s32.totalorder %s2322_s25, 0 }
   0xe   : > { %s2338_s30 = scalar_select %p99_p1, %s2248_s23, %s101_s28  }
   0xf   : > { %p2340_p5 = por %p109_p2, %p108_p0  ;;  %p2344_p6 = por %p115_p4, %p114_p3 }
  0x10   : > { %2770 = sst [smem:[#allocation15_spill]] %s2338_s30  ;;  %p2767_p7 = scmp.eq.s32.totalorder %s2322_s25, 1 }
  0x11   : > { %p170_p8 = scmp.eq.s32.totalorder %s1714_s26, 1  ;;  %p2001_p10 = scmp.lt.s32.totalorder %s2252_s24, 2 }
  0x12   : > { %p2353_p11 = por %p2767_p7, %p108_p0  ;;  %s230_s11 = sand.u32 1, %s2248_s23  }
  0x13   : > { %p2357_p12 = por %p170_p8, %p114_p3  ;;  %s1766_s12 = sshll.u32 %s2252_s24, 9 }
  0x14   : > { %s2773_s9 = scalar_select %p2353_p11, 1, 0 }
  0x15   : > { %s2774_s10 = scalar_select %p2357_p12, 1, 0 }
  0x16   : > { %s1717_s13 = sshll.u32 %s230_s11, 5  ;;  %s2775_s3 = sld [smem:[#allocation16_spill]] }
  0x17   : > { %s234_s17 = scalar_lea.vmem [#allocation6], %s1717_s13  ;;  %p2370_p13 = pnand %p2001_p10, %p2340_p5 }
  0x18   : > { %s241_s18 = sshll.u32 %s234_s17, 4  ;;  %s2376_s20 = scalar_lea.sflag [#allocation7], %s230_s11  ;;  %s2374_s18 = int_to_ptr.vmem [resolvable:$true] %s241_s18 }
  0x19   : > { %p2126_p1 = pneg %p2370_p13 }
  0x1c   : > { %s2366_s16 = scalar_lea.hbm %s2775_s3, %s1766_s12  ;;  %s2129_s7 = scalar_lea.hbm %s2775_s3, 1024 }
  0x1d   : > { %s2124_s26 = scalar_lea.hbm %s2366_s16, 512  ;;  %p2130_p4 = scmp.lt.u32.totalorder %s2366_s16, %s2775_s3 }
  0x1e   : > { %p2125_p0 = scmp.ne.s32.totalorder %s2366_s16, %s2124_s26  ;;  %p2131_p5 = scmp.lt.u32.totalorder %s2129_s7, %s2124_s26 }
  0x1f   : > { %p2133_p10 = scmp.lt.u32.totalorder %s2124_s26, %s2366_s16 }
  0x20   : > { %p2127_p2 = pnand %p2126_p1, %p2125_p0  ;;  %p2132_p8 = por %p2131_p5, %p2130_p4 }
  0x22   : > { %p2128_p3 = pneg %p2127_p2  ;;  %p2134_p9 = por %p2133_p10, %p2132_p8 }
  0x24   : > { %p2135_p7 = pnand %p2134_p9, %p2128_p3 }
  0x26   : > { %2138 = shalt.err (!%p2135_p7)
}
  0x27   : > { %s2139_s11 = scalar_lea.vmem %s2374_s18, 512  ;;  %s2254_s14 = smov [#allocation6]  }
  0x28   : > { %p2140_p0 = scmp.ne.s32.totalorder %s2374_s18, %s2139_s11  ;;  %s2144_s15 = sshll.u32 %s2254_s14, 4  ;;  %s2145_s15 = int_to_ptr.vmem [resolvable:$false] %s2144_s15 }
  0x29   : > { %s2146_s17 = scalar_lea.vmem %s2145_s15, 1024  ;;  %p2147_p11 = scmp.lt.s32.totalorder %s2374_s18, %s2145_s15 }
  0x2a   : > { %p2142_p2 = pnand %p2140_p0, %p2126_p1  ;;  %p2148_p4 = scmp.lt.s32.totalorder %s2146_s17, %s2139_s11 }
  0x2c   : > { %p2143_p12 = pneg %p2142_p2  ;;  %p2149_p5 = por %p2148_p4, %p2147_p11 }
  0x2e   : > { %p2150_p8 = pnand %p2149_p5, %p2143_p12 }
  0x30   : > { %2153 = shalt.err (!%p2150_p8)
}
  0x31   : > { %s2255_s26 = smov 128   ;;  %s2256_s28 = smov 8  }
  0x32   : > { %1993 = dma.hbm_to_vmem [thread:$0]  (!%p2370_p13), %s2366_s16, 512, %s2374_s18, %s2376_s20, %s2255_s26, %s2255_s26, %s2256_s28  }
  0x33   : > { %p1720_p7 = scmp.ge.s32.totalorder %s2252_s24, 1  ;;  %p255_p9 = scmp.lt.s32.totalorder %s2252_s24, 3 }
  0x35   : > { %p256_p1 = pnand %p1720_p7, %p255_p9 }
  0x36   : > { %s2407_s29 = sand.u32 (!%p256_p1), 1, %s2244_s22  }
  0x37   : > { %259 = sbr.rel (%p256_p1) target bundleno = 5826 (0x16c2), region = 40  ;;  %s1721_s7 = sshll.u32 (!%p256_p1), %s2407_s29, 5 }
  0x38   : > { %s262_s12 = scalar_lea.sflag (!%p256_p1), [#allocation7], %s2407_s29  ;;  %s2411_s13 = scalar_lea.vmem (!%p256_p1), [#allocation6], %s1721_s7 }
  0x3e   : > { %2227 = dma.done.wait (%p2344_p6), %s262_s12, 512  }
  0x3f   : > { %2229 = vsyncadd (%p2344_p6), %s262_s12, 4294966784  ;;  %s1722_s16 = sshll.u32 %s2407_s29, 3  ;;  %p307_p11 = scmp.lt.s32.totalorder %s2322_s25, 1 }
  0x40   : > { %s2430_s8 = scalar_lea.vmem [#allocation9], %s1722_s16  ;;  %s2432_s28 = scalar_lea.vmem [#allocation10], %s1722_s16 }
  0x41   : > { %s2420_s18 = scalar_select %p307_p11, %s2322_s25, 1 }
  0x42   : > { %p1726_p6 = scmp.ne.s32.totalorder %s2322_s25, 0 }
  0x43   : > { %s1767_s19 = sshll.u32 %s2420_s18, 5  ;;  %s314_s14 = scalar_lea.vmem %s2764_s4, %s2420_s18  ;;  %v320_v0 = vld [vmem:[%s2760_s0] sm:$0xff] (!%p1726_p6)  ;;  %vm328_vm0 = vcmask (!%p1726_p6), 261120   ;;  %v321_v1 = vld [vmem:[%s2760_s0 + $0x8] sm:$0xff] (!%p1726_p6)  ;;  %v322_v2 = vld [vmem:[%s2760_s0 + $0x10] sm:$0xff] (!%p1726_p6) }
  0x44   : > { %s311_s26 = scalar_lea.vmem %s2762_s2, %s1767_s19  ;;  %319 = sbr.rel (%p1726_p6) target bundleno = 75 (0x4b), region = 48  ;;  %329 = vst.msk [vmem:[#allocation2] sm:$0xff] (!%p1726_p6), %vm328_vm0, %v320_v0  ;;  %330 = vst.msk [vmem:[#allocation2 + $0x8] sm:$0xff] (!%p1726_p6), %vm328_vm0, %v321_v1  ;;  %v323_v3 = vld [vmem:[%s2760_s0 + $0x18] sm:$0xff] (!%p1726_p6)  ;;  %v324_v4 = vld [vmem:[%s2760_s0 + $0x20] sm:$0xff] (!%p1726_p6) }
  0x45   : > { %331 = vst.msk [vmem:[#allocation2 + $0x10] sm:$0xff] (!%p1726_p6), %vm328_vm0, %v322_v2  ;;  %v325_v5 = vld [vmem:[%s2760_s0 + $0x28] sm:$0xff] (!%p1726_p6)  ;;  %332 = vst.msk [vmem:[#allocation2 + $0x18] sm:$0xff] (!%p1726_p6), %vm328_vm0, %v323_v3  ;;  %v326_v6 = vld [vmem:[%s2760_s0 + $0x30] sm:$0xff] (!%p1726_p6) }
  0x46   : > { %333 = vst.msk [vmem:[#allocation2 + $0x20] sm:$0xff] (!%p1726_p6), %vm328_vm0, %v324_v4  ;;  %334 = vst.msk [vmem:[#allocation2 + $0x28] sm:$0xff] (!%p1726_p6), %vm328_vm0, %v325_v5  ;;  %v327_v7 = vld [vmem:[%s2760_s0 + $0x38] sm:$0xff] (!%p1726_p6) }
  0x47   : > { %335 = vst.msk [vmem:[#allocation2 + $0x30] sm:$0xff] (!%p1726_p6), %vm328_vm0, %v326_v6  ;;  %336 = vst.msk [vmem:[#allocation2 + $0x38] sm:$0xff] (!%p1726_p6), %vm328_vm0, %v327_v7 }
  0x4b PF: > { %v345_v8 = vld [vmem:[%s311_s26] sm:$0xff]  ;;  %v346_v9 = vld [vmem:[%s311_s26 + $0x8] sm:$0xff]  ;;  %v347_v10 = vld [vmem:[%s311_s26 + $0x10] sm:$0xff]  ;;  %vm356_vm1 = vcmask 261120   ;;  %v2257_v14 = vmov 0.0|0.0   ;;  %v2258_v15 = vmov 0.0  }
  0x4c   : > { %v1928_v11 = vpack.c.bf16 %v346_v9, %v345_v8  ;;  %v348_v12 = vld [vmem:[%s311_s26 + $0x18] sm:$0xff]  ;;  %v337_v13 = vld [vmem:[#allocation2] sm:$0xff]  ;;  %1936 = vmatprep.subr.bf16.mxu1 %v2257_v14  ;;  %499 = vst.msk [vmem:[#allocation4] sm:$0xff] %vm356_vm1, %v2258_v15  ;;  %500 = vst.msk [vmem:[#allocation5] sm:$0xff] %vm356_vm1, %v2258_v15  ;;  %vm2259_vm2 = vmmov 0   ;;  %v2260_v33 = vmov 0  }
  0x4d   : > { %v1932_v16 = vpack.c.bf16 %v348_v12, %v347_v10  ;;  %1828 = vmatprep.mubr.msk.f32.mxu0 %vm356_vm1, %v337_v13  ;;  %v494_v17 = vld [vmem:[%s2411_s13] sm:$0xff]  ;;  %v495_v18 = vld [vmem:[%s2411_s13 + $0x8] sm:$0xff]  ;;  %v496_v19 = vld [vmem:[%s2411_s13 + $0x10] sm:$0xff]  ;;  %1848 = vmatprep.mubr.msk.f32.mxu1 %vm2259_vm2, %v2258_v15  ;;  %s2262_s18 = smov 32   ;;  %s2263_s15 = smov 96  }
  0x4e   : > { %1929 = vmatprep.subr.bf16.mxu0 %v1928_v11  ;;  %v2470_v20 = vpack.c.bf16 %v495_v18, %v494_v17  ;;  %v497_v21 = vld [vmem:[%s2411_s13 + $0x18] sm:$0xff]  ;;  %v2485_v25 = vld [vmem:[%s314_s14] ss:$0 sm:$0xff]  ;;  %2044 = vset.pattern.permute.xlu1 %v2260_v33  ;;  %s2261_s13 = smov 64   ;;  %v339_v44 = vld [vmem:[#allocation2 + $0x10] sm:$0xff]  ;;  %p2777_p12 = scmp.eq.s32.totalorder %s2322_s25, 1 }
  0x4f   : > { %1931 = vmatpush3.bf16.msra.mxu0 %v1928_v11  ;;  %v2474_v22 = vpack.c.bf16 %v497_v21, %v496_v19  ;;  %v338_v23 = vld [vmem:[#allocation2 + $0x8] sm:$0xff]  ;;  %2045 = vset.pattern.permute.xlu0 %v2260_v33  ;;  %v2496_v39 = vld [vmem:[%s2761_s1] sm:$0xff]  ;;  %v340_v45 = vld [vmem:[#allocation2 + $0x18] sm:$0xff] }
  0x50   : > { %1933 = vmatprep.subr.bf16.mxu0 %v1932_v16  ;;  %1938 = vmatpush3.bf16.msra.mxu1 %v2470_v20  ;;  %vm606_vm3 = vcmp.gt.s32.totalorder %v2496_v39, 0  ;;  %v341_v46 = vld [vmem:[#allocation2 + $0x20] sm:$0xff]  ;;  %v342_v47 = vld [vmem:[#allocation2 + $0x28] sm:$0xff]  ;;  %v343_v48 = vld [vmem:[#allocation2 + $0x30] sm:$0xff] }
  0x51   : > { %1939 = vmatprep.subr.bf16.mxu1 %v2257_v14  ;;  %v607_v43 = vsel %vm606_vm3, 1, %v2260_v33  ;;  %v344_v49 = vld [vmem:[#allocation2 + $0x38] sm:$0xff] }
  0x53   : > { %1935 = vmatpush3.bf16.msra.mxu0 %v1932_v16  ;;  %v501_v24 = vld [vmem:[#allocation4] sm:$0xff]  ;;  %v502_v35 = vld [vmem:[#allocation5] sm:$0xff] }
  0x54   : > { %1941 = vmatpush3.bf16.msra.mxu1 %v2474_v22 }
  0x56   : > { %1829 = vmatmul.mubr.msk.f32.vlgmr.msra.gmra.mrb[0].mxu0 %vm356_vm1, %v338_v23 }
  0x57   : > { %1849 = vmatmul.mubr.msk.f32.vlgmr.msra.gmra.mrb[0].mxu1 %vm356_vm1, %v501_v24  ;;  %1831 = vmatprep.mubr.msk.f32.mxu0 %vm356_vm1, %v339_v44 }
  0x5a   : > { %1832 = vmatmul.mubr.msk.f32.gmra.mrb[2].mxu0 %vm356_vm1, %v340_v45 }
  0x5b   : > { %1834 = vmatprep.mubr.msk.f32.mxu0 %vm356_vm1, %v341_v46 }
  0x5e   : > { %1835 = vmatmul.mubr.msk.f32.gmra.mrb[4].mxu0 %vm356_vm1, %v342_v47 }
  0x5f   : > { %1837 = vmatprep.mubr.msk.f32.mxu0 %vm356_vm1, %v343_v48 }
  0x62   : > { %1838 = vmatmul.mubr.msk.f32.gmra.mrb[6].mxu0 %vm356_vm1, %v344_v49 }
 0x129   : > { %v1830_v26 = vpop.f32.mrb[0].mxu0 }
 0x12a   : > { %v453_v27 = vadd.f32 %v1830_v26, %v2485_v25  ;;  %v447_v28 = vpop.f32.mrb[1].mxu0  ;;  %v573_v29 = vpop.f32.mrb[0].mxu1 }
 0x12b   : > { %v448_v30 = vadd.f32 %v2485_v25, %v447_v28  ;;  %v1850_v31 = vpop.f32.mrb[1].mxu1 }
 0x12c   : > { %487 = vst [vmem:[#allocation3 + $0x8] sm:$0xff] %v453_v27 }
 0x12d   : > { %v577_v32 = vadd.f32 %v573_v29, %v448_v30  ;;  %v1833_v57 = vpop.f32.mrb[2].mxu0 }
 0x12e   : > { %v463_v58 = vadd.f32 %v1833_v57, %v2485_v25  ;;  %v457_v59 = vpop.f32.mrb[3].mxu0 }
 0x12f   : > { %2046 = vtanh.f32 %v577_v32  ;;  %v1737_v36 = vmul.f32 -1.442695, %v577_v32  ;;  %v458_v60 = vadd.f32 %v2485_v25, %v457_v59 }
 0x130   : > { %489 = vst [vmem:[#allocation3 + $0x18] sm:$0xff] %v463_v58 }
 0x131   : > { %2048 = vpow2.f32 %v1737_v36  ;;  %488 = vst [vmem:[#allocation3 + $0x10] sm:$0xff] %v458_v60  ;;  %v1836_v61 = vpop.f32.mrb[4].mxu0 }
 0x132   : > { %v473_v62 = vadd.f32 %v1836_v61, %v2485_v25  ;;  %v467_v63 = vpop.f32.mrb[5].mxu0 }
 0x133   : > { %v468_v0 = vadd.f32 %v2485_v25, %v467_v63 }
 0x134   : > { %491 = vst [vmem:[#allocation3 + $0x28] sm:$0xff] %v473_v62 }
 0x135   : > { %490 = vst [vmem:[#allocation3 + $0x20] sm:$0xff] %v468_v0  ;;  %v1839_v1 = vpop.f32.mrb[6].mxu0 }
 0x136   : > { %v483_v2 = vadd.f32 %v1839_v1, %v2485_v25  ;;  %v477_v3 = vpop.f32.mrb[7].mxu0 }
 0x137   : > { %v478_v4 = vadd.f32 %v2485_v25, %v477_v3 }
 0x138   : > { %493 = vst [vmem:[#allocation3 + $0x38] sm:$0xff] %v483_v2 }
 0x139   : > { %v2047_v34 = vpop.eup %2046  ;;  %492 = vst [vmem:[#allocation3 + $0x30] sm:$0xff] %v478_v4 }
 0x13a   : > { %591 = vrot.lane.b32.xlu0 %v2047_v34, %s2261_s13 }
 0x13b   : > { %v2049_v37 = vpop.eup %2048 }
 0x13c   : > { %v581_v38 = vadd.f32 1.0, %v2049_v37 }
 0x13e   : > { %586 = vrot.lane.b32.xlu0 %v502_v35, %s2262_s18  ;;  %2050 = vrcp.f32 %v581_v38 }
 0x148   : > { %v2051_v40 = vpop.eup %2050 }
 0x1ac   : > { %v592_v41 = vpop.permute.xlu0 %591 }
 0x1ad   : > { %v594_v42 = vmul.f32 %v2051_v40, %v592_v41 }
 0x1af   : > { %596 = vrot.lane.b32.xlu1 %v594_v42, %s2262_s18 }
 0x1b0   : > { %v587_v50 = vpop.permute.xlu0 %586 }
 0x1b1   : > { %v589_v51 = vmul.f32 %v2051_v40, %v587_v50 }
 0x1b3   : > { %609 = vperm.xlu1 %2044, %v607_v43  }
 0x1b7   : > { %612 = vrot.lane.b32.xlu1 %v501_v24, %s2263_s15 }
 0x221   : > { %v597_v52 = vpop.permute.xlu1 %596 }
 0x222   : > { %v599_v53 = vadd.f32 %v597_v52, %v589_v51 }
 0x224   : > { %2052 = vtanh.f32 %v599_v53 }
 0x22e   : > { %v2053_v54 = vpop.eup %2052 }
 0x22f   : > { %602 = vrot.lane.b32.xlu0 %v2053_v54, %s2261_s13 }
 0x232   : > { %v610_v55 = vpop.permute.xlu1 %609 }
 0x233   : > { %vm611_vm4 = vcmp.eq.s32.totalorder %v610_v55, 1 }
 0x234   : > { %v616_v56 = vsel %vm611_vm4, %v599_v53, %v587_v50 }
 0x235   : > { %623 = vrot.lane.b32.xlu1 %v616_v56, %s2263_s15 }
 0x236   : > { %v613_v6 = vpop.permute.xlu1 %612 }
 0x2a1   : > { %v603_v5 = vpop.permute.xlu0 %602 }
 0x2a2   : > { %v605_v7 = vmul.f32 %v2051_v40, %v603_v5 }
 0x2a4   : > { %v615_v8 = vsel %vm611_vm4, %v605_v7, %v613_v6 }
 0x2a5   : > { %618 = vrot.lane.b32.xlu0 %v615_v8, %s2262_s18 }
 0x2a7   : > { %v624_v9 = vpop.permute.xlu1 %623 }
 0x2a8   : > { %626 = vst.msk [vmem:[#allocation5] sm:$0xff] %vm356_vm1, %v624_v9 }
 0x312   : > { %629 = sbr.rel (%p2777_p12) target bundleno = 793 (0x319), region = 52 }
 0x317   : > { %v619_v10 = vpop.permute.xlu0 %618 }
 0x318   : > { %621 = vst.msk [vmem:[#allocation4] sm:$0xff] %vm356_vm1, %v619_v10  ;;  %630 = vst.msk [vmem:[#allocation2] sm:$0xff] (!%p2777_p12), %vm356_vm1, %v619_v10 }
 0x319 PF: > { %1942 = vmatprep.subr.bf16.mxu1 %v2257_v14  ;;  %1859 = vmatprep.mubr.msk.f32.mxu1 %vm2259_vm2, %v2258_v15  ;;  %v634_v12 = vld [vmem:[#allocation3 + $0x8] sm:$0xff]  ;;  %vm737_vm5 = vcmp.gt.s32.totalorder %v2496_v39, 1  ;;  %p2778_p13 = scmp.eq.s32.totalorder %s2322_s25, 1 }
 0x31a   : > { %1944 = vmatpush3.bf16.msra.mxu1 %v2470_v20  ;;  %2054 = vset.pattern.permute.xlu1 %v2260_v33  ;;  %v632_v19 = vld [vmem:[#allocation5] sm:$0xff]  ;;  %v738_v28 = vsel %vm737_vm5, 1, %v2260_v33 }
 0x31b   : > { %1945 = vmatprep.subr.bf16.mxu1 %v2257_v14  ;;  %2055 = vset.pattern.permute.xlu0 %v2260_v33 }
 0x31e   : > { %1947 = vmatpush3.bf16.msra.mxu1 %v2474_v22 }
 0x31f   : > { %v631_v11 = vld [vmem:[#allocation4] sm:$0xff] }
 0x321   : > { %1860 = vmatmul.mubr.msk.f32.vlgmr.msra.gmra.mrb[2].mxu1 %vm356_vm1, %v631_v11 }
 0x3f4   : > { %v704_v13 = vpop.f32.mrb[2].mxu1 }
 0x3f5   : > { %v708_v16 = vadd.f32 %v704_v13, %v634_v12  ;;  %v1861_v17 = vpop.f32.mrb[3].mxu1 }
 0x3f7   : > { %2056 = vtanh.f32 %v708_v16  ;;  %v1740_v21 = vmul.f32 -1.442695, %v708_v16 }
 0x3f9   : > { %2058 = vpow2.f32 %v1740_v21 }
 0x401   : > { %v2057_v18 = vpop.eup %2056 }
 0x402   : > { %722 = vrot.lane.b32.xlu0 %v2057_v18, %s2261_s13 }
 0x403   : > { %v2059_v23 = vpop.eup %2058 }
 0x404   : > { %v712_v24 = vadd.f32 1.0, %v2059_v23 }
 0x406   : > { %717 = vrot.lane.b32.xlu0 %v632_v19, %s2262_s18  ;;  %2060 = vrcp.f32 %v712_v24 }
 0x410   : > { %v2061_v25 = vpop.eup %2060 }
 0x474   : > { %v723_v26 = vpop.permute.xlu0 %722 }
 0x475   : > { %v725_v27 = vmul.f32 %v2061_v25, %v723_v26 }
 0x477   : > { %727 = vrot.lane.b32.xlu1 %v725_v27, %s2262_s18 }
 0x478   : > { %v718_v29 = vpop.permute.xlu0 %717 }
 0x479   : > { %v720_v30 = vmul.f32 %v2061_v25, %v718_v29 }
 0x47b   : > { %740 = vperm.xlu1 %2054, %v738_v28  }
 0x47f   : > { %743 = vrot.lane.b32.xlu1 %v631_v11, %s2263_s15 }
 0x4e9   : > { %v728_v31 = vpop.permute.xlu1 %727 }
 0x4ea   : > { %v730_v32 = vadd.f32 %v728_v31, %v720_v30 }
 0x4ec   : > { %2062 = vtanh.f32 %v730_v32 }
 0x4f6   : > { %v2063_v34 = vpop.eup %2062 }
 0x4f7   : > { %733 = vrot.lane.b32.xlu0 %v2063_v34, %s2261_s13 }
 0x4fa   : > { %v741_v35 = vpop.permute.xlu1 %740 }
 0x4fb   : > { %vm742_vm6 = vcmp.eq.s32.totalorder %v741_v35, 1 }
 0x4fc   : > { %v747_v36 = vsel %vm742_vm6, %v730_v32, %v718_v29 }
 0x4fd   : > { %754 = vrot.lane.b32.xlu1 %v747_v36, %s2263_s15 }
 0x4fe   : > { %v744_v38 = vpop.permute.xlu1 %743 }
 0x569   : > { %v734_v37 = vpop.permute.xlu0 %733 }
 0x56a   : > { %v736_v40 = vmul.f32 %v2061_v25, %v734_v37 }
 0x56c   : > { %v746_v41 = vsel %vm742_vm6, %v736_v40, %v744_v38 }
 0x56d   : > { %749 = vrot.lane.b32.xlu0 %v746_v41, %s2262_s18 }
 0x56f   : > { %v755_v42 = vpop.permute.xlu1 %754 }
 0x570   : > { %757 = vst.msk [vmem:[#allocation5] sm:$0xff] %vm356_vm1, %v755_v42 }
 0x5da   : > { %760 = sbr.rel (%p2778_p13) target bundleno = 1505 (0x5e1), region = 56 }
 0x5df   : > { %v750_v43 = vpop.permute.xlu0 %749 }
 0x5e0   : > { %752 = vst.msk [vmem:[#allocation4] sm:$0xff] %vm356_vm1, %v750_v43  ;;  %762 = vst.msk [vmem:[#allocation2 + $0x8] sm:$0xff] (!%p2778_p13), %vm356_vm1, %v750_v43 }
 0x5e1 PF: > { %1948 = vmatprep.subr.bf16.mxu0 %v2257_v14  ;;  %1870 = vmatprep.mubr.msk.f32.mxu0 %vm2259_vm2, %v2258_v15  ;;  %v766_v45 = vld [vmem:[#allocation3 + $0x10] sm:$0xff]  ;;  %v764_v50 = vld [vmem:[#allocation5] sm:$0xff]  ;;  %vm869_vm7 = vcmp.gt.s32.totalorder %v2496_v39, 2  ;;  %p2779_p3 = scmp.eq.s32.totalorder %s2322_s25, 1 }
 0x5e2   : > { %1950 = vmatpush3.bf16.msra.mxu0 %v2470_v20  ;;  %2064 = vset.pattern.permute.xlu1 %v2260_v33  ;;  %v870_v57 = vsel %vm869_vm7, 1, %v2260_v33 }
 0x5e3   : > { %1951 = vmatprep.subr.bf16.mxu0 %v2257_v14  ;;  %2065 = vset.pattern.permute.xlu0 %v2260_v33 }
 0x5e6   : > { %1953 = vmatpush3.bf16.msra.mxu0 %v2474_v22 }
 0x5e7   : > { %v763_v44 = vld [vmem:[#allocation4] sm:$0xff] }
 0x5e9   : > { %1871 = vmatmul.mubr.msk.f32.vlgmr.msra.gmra.mrb[8].mxu0 %vm356_vm1, %v763_v44 }
 0x6bc   : > { %v836_v46 = vpop.f32.mrb[8].mxu0 }
 0x6bd   : > { %v840_v47 = vadd.f32 %v836_v46, %v766_v45  ;;  %v1872_v48 = vpop.f32.mrb[9].mxu0 }
 0x6bf   : > { %2066 = vtanh.f32 %v840_v47  ;;  %v1743_v51 = vmul.f32 -1.442695, %v840_v47 }
 0x6c1   : > { %2068 = vpow2.f32 %v1743_v51 }
 0x6c9   : > { %v2067_v49 = vpop.eup %2066 }
 0x6ca   : > { %854 = vrot.lane.b32.xlu0 %v2067_v49, %s2261_s13 }
 0x6cb   : > { %v2069_v52 = vpop.eup %2068 }
 0x6cc   : > { %v844_v53 = vadd.f32 1.0, %v2069_v52 }
 0x6ce   : > { %849 = vrot.lane.b32.xlu0 %v764_v50, %s2262_s18  ;;  %2070 = vrcp.f32 %v844_v53 }
 0x6d8   : > { %v2071_v54 = vpop.eup %2070 }
 0x73c   : > { %v855_v55 = vpop.permute.xlu0 %854 }
 0x73d   : > { %v857_v56 = vmul.f32 %v2071_v54, %v855_v55 }
 0x73f   : > { %859 = vrot.lane.b32.xlu1 %v857_v56, %s2262_s18 }
 0x740   : > { %v850_v58 = vpop.permute.xlu0 %849 }
 0x741   : > { %v852_v59 = vmul.f32 %v2071_v54, %v850_v58 }
 0x743   : > { %872 = vperm.xlu1 %2064, %v870_v57  }
 0x747   : > { %875 = vrot.lane.b32.xlu1 %v763_v44, %s2263_s15 }
 0x7b1   : > { %v860_v60 = vpop.permute.xlu1 %859 }
 0x7b2   : > { %v862_v61 = vadd.f32 %v860_v60, %v852_v59 }
 0x7b4   : > { %2072 = vtanh.f32 %v862_v61 }
 0x7be   : > { %v2073_v62 = vpop.eup %2072 }
 0x7bf   : > { %865 = vrot.lane.b32.xlu0 %v2073_v62, %s2261_s13 }
 0x7c2   : > { %v873_v63 = vpop.permute.xlu1 %872 }
 0x7c3   : > { %vm874_vm8 = vcmp.eq.s32.totalorder %v873_v63, 1 }
 0x7c4   : > { %v879_v0 = vsel %vm874_vm8, %v862_v61, %v850_v58 }
 0x7c5   : > { %886 = vrot.lane.b32.xlu1 %v879_v0, %s2263_s15 }
 0x7c6   : > { %v876_v2 = vpop.permute.xlu1 %875 }
 0x831   : > { %v866_v1 = vpop.permute.xlu0 %865 }
 0x832   : > { %v868_v3 = vmul.f32 %v2071_v54, %v866_v1 }
 0x834   : > { %v878_v4 = vsel %vm874_vm8, %v868_v3, %v876_v2 }
 0x835   : > { %881 = vrot.lane.b32.xlu0 %v878_v4, %s2262_s18 }
 0x837   : > { %v887_v5 = vpop.permute.xlu1 %886 }
 0x838   : > { %889 = vst.msk [vmem:[#allocation5] sm:$0xff] %vm356_vm1, %v887_v5 }
 0x8a2   : > { %892 = sbr.rel (%p2779_p3) target bundleno = 2217 (0x8a9), region = 60 }
 0x8a7   : > { %v882_v6 = vpop.permute.xlu0 %881 }
 0x8a8   : > { %884 = vst.msk [vmem:[#allocation4] sm:$0xff] %vm356_vm1, %v882_v6  ;;  %894 = vst.msk [vmem:[#allocation2 + $0x10] sm:$0xff] (!%p2779_p3), %vm356_vm1, %v882_v6 }
 0x8a9 PF: > { %1954 = vmatprep.subr.bf16.mxu1 %v2257_v14  ;;  %1881 = vmatprep.mubr.msk.f32.mxu1 %vm2259_vm2, %v2258_v15  ;;  %v898_v8 = vld [vmem:[#allocation3 + $0x18] sm:$0xff]  ;;  %v896_v13 = vld [vmem:[#allocation5] sm:$0xff]  ;;  %vm1001_vm9 = vcmp.gt.s32.totalorder %v2496_v39, 3  ;;  %p2780_p10 = scmp.eq.s32.totalorder %s2322_s25, 1 }
 0x8aa   : > { %1956 = vmatpush3.bf16.msra.mxu1 %v2470_v20  ;;  %2074 = vset.pattern.permute.xlu1 %v2260_v33  ;;  %v1002_v24 = vsel %vm1001_vm9, 1, %v2260_v33 }
 0x8ab   : > { %1957 = vmatprep.subr.bf16.mxu1 %v2257_v14  ;;  %2075 = vset.pattern.permute.xlu0 %v2260_v33 }
 0x8ae   : > { %1959 = vmatpush3.bf16.msra.mxu1 %v2474_v22 }
 0x8af   : > { %v895_v7 = vld [vmem:[#allocation4] sm:$0xff] }
 0x8b1   : > { %1882 = vmatmul.mubr.msk.f32.vlgmr.msra.gmra.mrb[4].mxu1 %vm356_vm1, %v895_v7 }
 0x984   : > { %v968_v9 = vpop.f32.mrb[4].mxu1 }
 0x985   : > { %v972_v10 = vadd.f32 %v968_v9, %v898_v8  ;;  %v1883_v11 = vpop.f32.mrb[5].mxu1 }
 0x987   : > { %2076 = vtanh.f32 %v972_v10  ;;  %v1746_v16 = vmul.f32 -1.442695, %v972_v10 }
 0x989   : > { %2078 = vpow2.f32 %v1746_v16 }
 0x991   : > { %v2077_v12 = vpop.eup %2076 }
 0x992   : > { %986 = vrot.lane.b32.xlu0 %v2077_v12, %s2261_s13 }
 0x993   : > { %v2079_v17 = vpop.eup %2078 }
 0x994   : > { %v976_v18 = vadd.f32 1.0, %v2079_v17 }
 0x996   : > { %981 = vrot.lane.b32.xlu0 %v896_v13, %s2262_s18  ;;  %2080 = vrcp.f32 %v976_v18 }
 0x9a0   : > { %v2081_v19 = vpop.eup %2080 }
 0xa04   : > { %v987_v21 = vpop.permute.xlu0 %986 }
 0xa05   : > { %v989_v23 = vmul.f32 %v2081_v19, %v987_v21 }
 0xa07   : > { %991 = vrot.lane.b32.xlu1 %v989_v23, %s2262_s18 }
 0xa08   : > { %v982_v25 = vpop.permute.xlu0 %981 }
 0xa09   : > { %v984_v26 = vmul.f32 %v2081_v19, %v982_v25 }
 0xa0b   : > { %1004 = vperm.xlu1 %2074, %v1002_v24  }
 0xa0f   : > { %1007 = vrot.lane.b32.xlu1 %v895_v7, %s2263_s15 }
 0xa79   : > { %v992_v27 = vpop.permute.xlu1 %991 }
 0xa7a   : > { %v994_v28 = vadd.f32 %v992_v27, %v984_v26 }
 0xa7c   : > { %2082 = vtanh.f32 %v994_v28 }
 0xa86   : > { %v2083_v29 = vpop.eup %2082 }
 0xa87   : > { %997 = vrot.lane.b32.xlu0 %v2083_v29, %s2261_s13 }
 0xa8a   : > { %v1005_v30 = vpop.permute.xlu1 %1004 }
 0xa8b   : > { %vm1006_vm10 = vcmp.eq.s32.totalorder %v1005_v30, 1 }
 0xa8c   : > { %v1011_v31 = vsel %vm1006_vm10, %v994_v28, %v982_v25 }
 0xa8d   : > { %1018 = vrot.lane.b32.xlu1 %v1011_v31, %s2263_s15 }
 0xa8e   : > { %v1008_v34 = vpop.permute.xlu1 %1007 }
 0xaf9   : > { %v998_v32 = vpop.permute.xlu0 %997 }
 0xafa   : > { %v1000_v35 = vmul.f32 %v2081_v19, %v998_v32 }
 0xafc   : > { %v1010_v36 = vsel %vm1006_vm10, %v1000_v35, %v1008_v34 }
 0xafd   : > { %1013 = vrot.lane.b32.xlu0 %v1010_v36, %s2262_s18 }
 0xaff   : > { %v1019_v37 = vpop.permute.xlu1 %1018 }
 0xb00   : > { %1021 = vst.msk [vmem:[#allocation5] sm:$0xff] %vm356_vm1, %v1019_v37 }
 0xb6a   : > { %1024 = sbr.rel (%p2780_p10) target bundleno = 2929 (0xb71), region = 64 }
 0xb6f   : > { %v1014_v38 = vpop.permute.xlu0 %1013 }
 0xb70   : > { %1016 = vst.msk [vmem:[#allocation4] sm:$0xff] %vm356_vm1, %v1014_v38  ;;  %1026 = vst.msk [vmem:[#allocation2 + $0x18] sm:$0xff] (!%p2780_p10), %vm356_vm1, %v1014_v38 }
 0xb71 PF: > { %1960 = vmatprep.subr.bf16.mxu0 %v2257_v14  ;;  %1892 = vmatprep.mubr.msk.f32.mxu0 %vm2259_vm2, %v2258_v15  ;;  %v1030_v41 = vld [vmem:[#allocation3 + $0x20] sm:$0xff]  ;;  %v1028_v46 = vld [vmem:[#allocation5] sm:$0xff]  ;;  %vm1133_vm11 = vcmp.gt.s32.totalorder %v2496_v39, 4  ;;  %p2781_p0 = scmp.eq.s32.totalorder %s2322_s25, 1 }
 0xb72   : > { %1962 = vmatpush3.bf16.msra.mxu0 %v2470_v20  ;;  %2084 = vset.pattern.permute.xlu1 %v2260_v33  ;;  %v1134_v53 = vsel %vm1133_vm11, 1, %v2260_v33 }
 0xb73   : > { %1963 = vmatprep.subr.bf16.mxu0 %v2257_v14  ;;  %2085 = vset.pattern.permute.xlu0 %v2260_v33 }
 0xb76   : > { %1965 = vmatpush3.bf16.msra.mxu0 %v2474_v22 }
 0xb77   : > { %v1027_v40 = vld [vmem:[#allocation4] sm:$0xff] }
 0xb79   : > { %1893 = vmatmul.mubr.msk.f32.vlgmr.msra.gmra.mrb[10].mxu0 %vm356_vm1, %v1027_v40 }
 0xc4c   : > { %v1100_v42 = vpop.f32.mrb[10].mxu0 }
 0xc4d   : > { %v1104_v43 = vadd.f32 %v1100_v42, %v1030_v41  ;;  %v1894_v44 = vpop.f32.mrb[11].mxu0 }
 0xc4f   : > { %2086 = vtanh.f32 %v1104_v43  ;;  %v1749_v47 = vmul.f32 -1.442695, %v1104_v43 }
 0xc51   : > { %2088 = vpow2.f32 %v1749_v47 }
 0xc59   : > { %v2087_v45 = vpop.eup %2086 }
 0xc5a   : > { %1118 = vrot.lane.b32.xlu0 %v2087_v45, %s2261_s13 }
 0xc5b   : > { %v2089_v48 = vpop.eup %2088 }
 0xc5c   : > { %v1108_v49 = vadd.f32 1.0, %v2089_v48 }
 0xc5e   : > { %1113 = vrot.lane.b32.xlu0 %v1028_v46, %s2262_s18  ;;  %2090 = vrcp.f32 %v1108_v49 }
 0xc68   : > { %v2091_v50 = vpop.eup %2090 }
 0xccc   : > { %v1119_v51 = vpop.permute.xlu0 %1118 }
 0xccd   : > { %v1121_v52 = vmul.f32 %v2091_v50, %v1119_v51 }
 0xccf   : > { %1123 = vrot.lane.b32.xlu1 %v1121_v52, %s2262_s18 }
 0xcd0   : > { %v1114_v54 = vpop.permute.xlu0 %1113 }
 0xcd1   : > { %v1116_v55 = vmul.f32 %v2091_v50, %v1114_v54 }
 0xcd3   : > { %1136 = vperm.xlu1 %2084, %v1134_v53  }
 0xcd7   : > { %1139 = vrot.lane.b32.xlu1 %v1027_v40, %s2263_s15 }
 0xd41   : > { %v1124_v56 = vpop.permute.xlu1 %1123 }
 0xd42   : > { %v1126_v57 = vadd.f32 %v1124_v56, %v1116_v55 }
 0xd44   : > { %2092 = vtanh.f32 %v1126_v57 }
 0xd4e   : > { %v2093_v58 = vpop.eup %2092 }
 0xd4f   : > { %1129 = vrot.lane.b32.xlu0 %v2093_v58, %s2261_s13 }
 0xd52   : > { %v1137_v59 = vpop.permute.xlu1 %1136 }
 0xd53   : > { %vm1138_vm12 = vcmp.eq.s32.totalorder %v1137_v59, 1 }
 0xd54   : > { %v1143_v60 = vsel %vm1138_vm12, %v1126_v57, %v1114_v54 }
 0xd55   : > { %1150 = vrot.lane.b32.xlu1 %v1143_v60, %s2263_s15 }
 0xd56   : > { %v1140_v62 = vpop.permute.xlu1 %1139 }
 0xdc1   : > { %v1130_v61 = vpop.permute.xlu0 %1129 }
 0xdc2   : > { %v1132_v63 = vmul.f32 %v2091_v50, %v1130_v61 }
 0xdc4   : > { %v1142_v0 = vsel %vm1138_vm12, %v1132_v63, %v1140_v62 }
 0xdc5   : > { %1145 = vrot.lane.b32.xlu0 %v1142_v0, %s2262_s18 }
 0xdc7   : > { %v1151_v1 = vpop.permute.xlu1 %1150 }
 0xdc8   : > { %1153 = vst.msk [vmem:[#allocation5] sm:$0xff] %vm356_vm1, %v1151_v1 }
 0xe32   : > { %1156 = sbr.rel (%p2781_p0) target bundleno = 3641 (0xe39), region = 68 }
 0xe37   : > { %v1146_v2 = vpop.permute.xlu0 %1145 }
 0xe38   : > { %1148 = vst.msk [vmem:[#allocation4] sm:$0xff] %vm356_vm1, %v1146_v2  ;;  %1158 = vst.msk [vmem:[#allocation2 + $0x20] sm:$0xff] (!%p2781_p0), %vm356_vm1, %v1146_v2 }
 0xe39 PF: > { %1966 = vmatprep.subr.bf16.mxu1 %v2257_v14  ;;  %1903 = vmatprep.mubr.msk.f32.mxu1 %vm2259_vm2, %v2258_v15  ;;  %v1162_v4 = vld [vmem:[#allocation3 + $0x28] sm:$0xff]  ;;  %vm1265_vm13 = vcmp.gt.s32.totalorder %v2496_v39, 5  ;;  %p2782_p2 = scmp.eq.s32.totalorder %s2322_s25, 1 }
 0xe3a   : > { %1968 = vmatpush3.bf16.msra.mxu1 %v2470_v20  ;;  %2094 = vset.pattern.permute.xlu1 %v2260_v33  ;;  %v1160_v9 = vld [vmem:[#allocation5] sm:$0xff]  ;;  %v1266_v18 = vsel %vm1265_vm13, 1, %v2260_v33 }
 0xe3b   : > { %1969 = vmatprep.subr.bf16.mxu1 %v2257_v14  ;;  %2095 = vset.pattern.permute.xlu0 %v2260_v33 }
 0xe3e   : > { %1971 = vmatpush3.bf16.msra.mxu1 %v2474_v22 }
 0xe3f   : > { %v1159_v3 = vld [vmem:[#allocation4] sm:$0xff] }
 0xe41   : > { %1904 = vmatmul.mubr.msk.f32.vlgmr.msra.gmra.mrb[6].mxu1 %vm356_vm1, %v1159_v3 }
 0xf14   : > { %v1232_v5 = vpop.f32.mrb[6].mxu1 }
 0xf15   : > { %v1236_v6 = vadd.f32 %v1232_v5, %v1162_v4  ;;  %v1905_v7 = vpop.f32.mrb[7].mxu1 }
 0xf17   : > { %2096 = vtanh.f32 %v1236_v6  ;;  %v1752_v10 = vmul.f32 -1.442695, %v1236_v6 }
 0xf19   : > { %2098 = vpow2.f32 %v1752_v10 }
 0xf21   : > { %v2097_v8 = vpop.eup %2096 }
 0xf22   : > { %1250 = vrot.lane.b32.xlu0 %v2097_v8, %s2261_s13 }
 0xf23   : > { %v2099_v11 = vpop.eup %2098 }
 0xf24   : > { %v1240_v12 = vadd.f32 1.0, %v2099_v11 }
 0xf26   : > { %1245 = vrot.lane.b32.xlu0 %v1160_v9, %s2262_s18  ;;  %2100 = vrcp.f32 %v1240_v12 }
 0xf30   : > { %v2101_v13 = vpop.eup %2100 }
 0xf94   : > { %v1251_v16 = vpop.permute.xlu0 %1250 }
 0xf95   : > { %v1253_v17 = vmul.f32 %v2101_v13, %v1251_v16 }
 0xf97   : > { %1255 = vrot.lane.b32.xlu1 %v1253_v17, %s2262_s18 }
 0xf98   : > { %v1246_v19 = vpop.permute.xlu0 %1245 }
 0xf99   : > { %v1248_v21 = vmul.f32 %v2101_v13, %v1246_v19 }
 0xf9b   : > { %1268 = vperm.xlu1 %2094, %v1266_v18  }
 0xf9f   : > { %1271 = vrot.lane.b32.xlu1 %v1159_v3, %s2263_s15 }
0x1009   : > { %v1256_v23 = vpop.permute.xlu1 %1255 }
0x100a   : > { %v1258_v24 = vadd.f32 %v1256_v23, %v1248_v21 }
0x100c   : > { %2102 = vtanh.f32 %v1258_v24 }
0x1016   : > { %v2103_v25 = vpop.eup %2102 }
0x1017   : > { %1261 = vrot.lane.b32.xlu0 %v2103_v25, %s2261_s13 }
0x101a   : > { %v1269_v26 = vpop.permute.xlu1 %1268 }
0x101b   : > { %vm1270_vm14 = vcmp.eq.s32.totalorder %v1269_v26, 1 }
0x101c   : > { %v1275_v27 = vsel %vm1270_vm14, %v1258_v24, %v1246_v19 }
0x101d   : > { %1282 = vrot.lane.b32.xlu1 %v1275_v27, %s2263_s15 }
0x101e   : > { %v1272_v29 = vpop.permute.xlu1 %1271 }
0x1089   : > { %v1262_v28 = vpop.permute.xlu0 %1261 }
0x108a   : > { %v1264_v30 = vmul.f32 %v2101_v13, %v1262_v28 }
0x108c   : > { %v1274_v31 = vsel %vm1270_vm14, %v1264_v30, %v1272_v29 }
0x108d   : > { %1277 = vrot.lane.b32.xlu0 %v1274_v31, %s2262_s18 }
0x108f   : > { %v1283_v32 = vpop.permute.xlu1 %1282 }
0x1090   : > { %1285 = vst.msk [vmem:[#allocation5] sm:$0xff] %vm356_vm1, %v1283_v32 }
0x10fa   : > { %1288 = sbr.rel (%p2782_p2) target bundleno = 4353 (0x1101), region = 72 }
0x10ff   : > { %v1278_v34 = vpop.permute.xlu0 %1277 }
0x1100   : > { %1280 = vst.msk [vmem:[#allocation4] sm:$0xff] %vm356_vm1, %v1278_v34  ;;  %1290 = vst.msk [vmem:[#allocation2 + $0x28] sm:$0xff] (!%p2782_p2), %vm356_vm1, %v1278_v34 }
0x1101 PF: > { %1972 = vmatprep.subr.bf16.mxu0 %v2257_v14  ;;  %1914 = vmatprep.mubr.msk.f32.mxu0 %vm2259_vm2, %v2258_v15  ;;  %v1294_v36 = vld [vmem:[#allocation3 + $0x30] sm:$0xff]  ;;  %v1292_v42 = vld [vmem:[#allocation5] sm:$0xff]  ;;  %vm1397_vm15 = vcmp.gt.s32.totalorder %v2496_v39, 6  ;;  %p2783_p4 = scmp.eq.s32.totalorder %s2322_s25, 1 }
0x1102   : > { %1974 = vmatpush3.bf16.msra.mxu0 %v2470_v20  ;;  %2104 = vset.pattern.permute.xlu1 %v2260_v33  ;;  %v1398_v49 = vsel %vm1397_vm15, 1, %v2260_v33 }
0x1103   : > { %1975 = vmatprep.subr.bf16.mxu0 %v2257_v14  ;;  %2105 = vset.pattern.permute.xlu0 %v2260_v33 }
0x1106   : > { %1977 = vmatpush3.bf16.msra.mxu0 %v2474_v22 }
0x1107   : > { %v1291_v35 = vld [vmem:[#allocation4] sm:$0xff] }
0x1109   : > { %1915 = vmatmul.mubr.msk.f32.vlgmr.msra.gmra.mrb[12].mxu0 %vm356_vm1, %v1291_v35 }
0x11dc   : > { %v1364_v37 = vpop.f32.mrb[12].mxu0 }
0x11dd   : > { %v1368_v38 = vadd.f32 %v1364_v37, %v1294_v36  ;;  %v1916_v40 = vpop.f32.mrb[13].mxu0 }
0x11df   : > { %2106 = vtanh.f32 %v1368_v38  ;;  %v1755_v43 = vmul.f32 -1.442695, %v1368_v38 }
0x11e1   : > { %2108 = vpow2.f32 %v1755_v43 }
0x11e9   : > { %v2107_v41 = vpop.eup %2106 }
0x11ea   : > { %1382 = vrot.lane.b32.xlu0 %v2107_v41, %s2261_s13 }
0x11eb   : > { %v2109_v44 = vpop.eup %2108 }
0x11ec   : > { %v1372_v45 = vadd.f32 1.0, %v2109_v44 }
0x11ee   : > { %1377 = vrot.lane.b32.xlu0 %v1292_v42, %s2262_s18  ;;  %2110 = vrcp.f32 %v1372_v45 }
0x11f8   : > { %v2111_v46 = vpop.eup %2110 }
0x125c   : > { %v1383_v47 = vpop.permute.xlu0 %1382 }
0x125d   : > { %v1385_v48 = vmul.f32 %v2111_v46, %v1383_v47 }
0x125f   : > { %1387 = vrot.lane.b32.xlu1 %v1385_v48, %s2262_s18 }
0x1260   : > { %v1378_v50 = vpop.permute.xlu0 %1377 }
0x1261   : > { %v1380_v51 = vmul.f32 %v2111_v46, %v1378_v50 }
0x1263   : > { %1400 = vperm.xlu1 %2104, %v1398_v49  }
0x1267   : > { %1403 = vrot.lane.b32.xlu1 %v1291_v35, %s2263_s15 }
0x12d1   : > { %v1388_v52 = vpop.permute.xlu1 %1387 }
0x12d2   : > { %v1390_v53 = vadd.f32 %v1388_v52, %v1380_v51 }
0x12d4   : > { %2112 = vtanh.f32 %v1390_v53 }
0x12de   : > { %v2113_v54 = vpop.eup %2112 }
0x12df   : > { %1393 = vrot.lane.b32.xlu0 %v2113_v54, %s2261_s13 }
0x12e2   : > { %v1401_v55 = vpop.permute.xlu1 %1400 }
0x12e3   : > { %vm1402_vm0 = vcmp.eq.s32.totalorder %v1401_v55, 1 }
0x12e4   : > { %v1407_v56 = vsel %vm1402_vm0, %v1390_v53, %v1378_v50 }
0x12e5   : > { %1414 = vrot.lane.b32.xlu1 %v1407_v56, %s2263_s15 }
0x12e6   : > { %v1404_v58 = vpop.permute.xlu1 %1403 }
0x1351   : > { %v1394_v57 = vpop.permute.xlu0 %1393 }
0x1352   : > { %v1396_v59 = vmul.f32 %v2111_v46, %v1394_v57 }
0x1354   : > { %v1406_v60 = vsel %vm1402_vm0, %v1396_v59, %v1404_v58 }
0x1355   : > { %1409 = vrot.lane.b32.xlu0 %v1406_v60, %s2262_s18 }
0x1357   : > { %v1415_v61 = vpop.permute.xlu1 %1414 }
0x1358   : > { %1417 = vst.msk [vmem:[#allocation5] sm:$0xff] %vm356_vm1, %v1415_v61 }
0x13c2   : > { %1420 = sbr.rel (%p2783_p4) target bundleno = 5065 (0x13c9), region = 76 }
0x13c7   : > { %v1410_v62 = vpop.permute.xlu0 %1409 }
0x13c8   : > { %1412 = vst.msk [vmem:[#allocation4] sm:$0xff] %vm356_vm1, %v1410_v62  ;;  %1422 = vst.msk [vmem:[#allocation2 + $0x30] sm:$0xff] (!%p2783_p4), %vm356_vm1, %v1410_v62 }
0x13c9 PF: > { %1978 = vmatprep.subr.bf16.mxu1 %v2257_v14  ;;  %1925 = vmatprep.mubr.msk.f32.mxu1 %vm2259_vm2, %v2258_v15  ;;  %v1426_v0 = vld [vmem:[#allocation3 + $0x38] sm:$0xff]  ;;  %v1424_v15 = vld [vmem:[#allocation5] sm:$0xff]  ;;  %vm1529_vm2 = vcmp.gt.s32.totalorder %v2496_v39, 7  ;;  %p2784_p5 = scmp.eq.s32.totalorder %s2322_s25, 1 }
0x13ca   : > { %1980 = vmatpush3.bf16.msra.mxu1 %v2470_v20  ;;  %2114 = vset.pattern.permute.xlu1 %v2260_v33  ;;  %v1530_v8 = vsel %vm1529_vm2, 1, %v2260_v33 }
0x13cb   : > { %1981 = vmatprep.subr.bf16.mxu1 %v2257_v14  ;;  %2115 = vset.pattern.permute.xlu0 %v2260_v33 }
0x13ce   : > { %1983 = vmatpush3.bf16.msra.mxu1 %v2474_v22 }
0x13cf   : > { %v1423_v63 = vld [vmem:[#allocation4] sm:$0xff] }
0x13d1   : > { %1926 = vmatmul.mubr.msk.f32.vlgmr.msra.gmra.mrb[8].mxu1 %vm356_vm1, %v1423_v63 }
0x14a4   : > { %v1496_v1 = vpop.f32.mrb[8].mxu1 }
0x14a5   : > { %v1500_v2 = vadd.f32 %v1496_v1, %v1426_v0  ;;  %v1927_v3 = vpop.f32.mrb[9].mxu1 }
0x14a7   : > { %2116 = vtanh.f32 %v1500_v2  ;;  %v1758_v20 = vmul.f32 -1.442695, %v1500_v2 }
0x14a9   : > { %2118 = vpow2.f32 %v1758_v20 }
0x14b1   : > { %v2117_v4 = vpop.eup %2116 }
0x14b2   : > { %1514 = vrot.lane.b32.xlu0 %v2117_v4, %s2261_s13 }
0x14b3   : > { %v2119_v14 = vpop.eup %2118 }
0x14b4   : > { %v1504_v5 = vadd.f32 1.0, %v2119_v14 }
0x14b6   : > { %1509 = vrot.lane.b32.xlu0 %v1424_v15, %s2262_s18  ;;  %2120 = vrcp.f32 %v1504_v5 }
0x14c0   : > { %v2121_v22 = vpop.eup %2120 }
0x1524   : > { %v1515_v6 = vpop.permute.xlu0 %1514 }
0x1525   : > { %v1517_v7 = vmul.f32 %v2121_v22, %v1515_v6 }
0x1527   : > { %1519 = vrot.lane.b32.xlu1 %v1517_v7, %s2262_s18 }
0x1528   : > { %v1510_v9 = vpop.permute.xlu0 %1509 }
0x1529   : > { %v1512_v10 = vmul.f32 %v2121_v22, %v1510_v9 }
0x152b   : > { %1532 = vperm.xlu1 %2114, %v1530_v8  }
0x152f   : > { %1535 = vrot.lane.b32.xlu1 %v1423_v63, %s2263_s15 }
0x1599   : > { %v1520_v11 = vpop.permute.xlu1 %1519 }
0x159a   : > { %v1522_v12 = vadd.f32 %v1520_v11, %v1512_v10 }
0x159c   : > { %2122 = vtanh.f32 %v1522_v12 }
0x15a6   : > { %v2123_v13 = vpop.eup %2122 }
0x15a7   : > { %1525 = vrot.lane.b32.xlu0 %v2123_v13, %s2261_s13 }
0x15aa   : > { %v1533_v16 = vpop.permute.xlu1 %1532 }
0x15ab   : > { %vm1534_vm3 = vcmp.eq.s32.totalorder %v1533_v16, 1 }
0x15ac   : > { %v1539_v17 = vsel %vm1534_vm3, %v1522_v12, %v1510_v9 }
0x15ad   : > { %1546 = vrot.lane.b32.xlu1 %v1539_v17, %s2263_s15 }
0x15ae   : > { %v1536_v18 = vpop.permute.xlu1 %1535 }
0x1619   : > { %v1526_v39 = vpop.permute.xlu0 %1525 }
0x161a   : > { %v1528_v19 = vmul.f32 %v2121_v22, %v1526_v39 }
0x161c   : > { %v1538_v33 = vsel %vm1534_vm3, %v1528_v19, %v1536_v18 }
0x161d   : > { %1541 = vrot.lane.b32.xlu0 %v1538_v33, %s2262_s18 }
0x161f   : > { %v1547_v21 = vpop.permute.xlu1 %1546 }
0x1620   : > { %1549 = vst.msk [vmem:[#allocation5] sm:$0xff] %vm356_vm1, %v1547_v21 }
0x168a   : > { %1552 = sbr.rel (%p2784_p5) target bundleno = 5777 (0x1691), region = 80 }
0x168f   : > { %v1542_v23 = vpop.permute.xlu0 %1541 }
0x1690   : > { %1544 = vst.msk [vmem:[#allocation4] sm:$0xff] %vm356_vm1, %v1542_v23  ;;  %1554 = vst.msk [vmem:[#allocation2 + $0x38] sm:$0xff] (!%p2784_p5), %vm356_vm1, %v1542_v23 }
0x1691 PF: > { %v1557_v25 = vld [vmem:[#allocation5] sm:$0xff]  ;;  %s1762_s17 = sshll.u32 %s2322_s25, 7  ;;  %s1578_s30 = sshll.u32 %s2430_s8, 4  ;;  %s1579_s30 = int_to_ptr.vmem [resolvable:$true] %s1578_s30 }
0x1692   : > { %1558 = vst.msk [vmem:[%s2432_s28] sm:$0xff] %vm356_vm1, %v1557_v25  ;;  %s2695_s3 = scalar_lea.hbm %s2765_s5, %s1762_s17  ;;  %s1560_s20 = scalar_lea.sflag [#allocation8], %s2407_s29 }
0x1693   : > { %s2154_s11 = scalar_lea.vmem %s1579_s30, 128  ;;  %p2785_p7 = scmp.ne.s32.totalorder %s2773_s9, 0 }
0x1694   : > { %p2155_p8 = scmp.ne.s32.totalorder %s1579_s30, %s2154_s11  ;;  %s2264_s26 = smov [#allocation9]  }
0x1695   : > { %s2158_s16 = sshll.u32 %s2264_s26, 4  ;;  %s2159_s16 = int_to_ptr.vmem [resolvable:$false] %s2158_s16 }
0x1696   : > { %p2156_p9 = pnand %p2155_p8, %p2785_p7  ;;  %s2160_s13 = scalar_lea.vmem %s2159_s16, 256 }
0x1697   : > { %v1555_v24 = vld [vmem:[#allocation4] sm:$0xff]  ;;  %p2161_p11 = scmp.lt.s32.totalorder %s1579_s30, %s2159_s16  ;;  %p2162_p6 = scmp.lt.s32.totalorder %s2160_s13, %s2154_s11 }
0x1698   : > { %1556 = vst.msk [vmem:[%s2430_s8] sm:$0xff] %vm356_vm1, %v1555_v24  ;;  %p2157_p1 = pneg %p2156_p9 }
0x1699   : > { %p2163_p12 = por %p2162_p6, %p2161_p11 }
0x169b   : > { %p2164_p13 = pnand %p2163_p12, %p2157_p1 }
0x169d   : > { %2167 = shalt.err (!%p2164_p13)
}
0x169e   : > { %s2168_s8 = scalar_lea.hbm %s2695_s3, 128  ;;  %s2172_s19 = scalar_lea.hbm %s2765_s5, 256 }
0x169f   : > { %p2169_p3 = scmp.ne.s32.totalorder %s2695_s3, %s2168_s8  ;;  %p2173_p2 = scmp.lt.u32.totalorder %s2695_s3, %s2765_s5 }
0x16a0   : > { %p2174_p4 = scmp.lt.u32.totalorder %s2172_s19, %s2168_s8  ;;  %p2176_p8 = scmp.lt.u32.totalorder %s2168_s8, %s2695_s3 }
0x16a1   : > { %p2170_p10 = pnand %p2169_p3, %p2785_p7 }
0x16a2   : > { %p2175_p5 = por %p2174_p4, %p2173_p2 }
0x16a3   : > { %p2171_p0 = pneg %p2170_p10 }
0x16a4   : > { %p2177_p9 = por %p2176_p8, %p2175_p5 }
0x16a6   : > { %p2178_p1 = pnand %p2177_p9, %p2171_p0 }
0x16a8   : > { %2181 = shalt.err (!%p2178_p1)
}
0x16a9   : > { %1986 = dma.vmem_to_hbm [thread:$0]  (%p2785_p7), %s1579_s30, 128, %s2695_s3, %s1560_s20  }
0x16aa   : > { %s2721_s26 = scalar_lea.hbm %s2766_s6, %s1762_s17  ;;  %s1591_s16 = sshll.u32 %s2432_s28, 4  ;;  %s1592_s16 = int_to_ptr.vmem [resolvable:$true] %s1591_s16 }
0x16ab   : > { %s1565_s13 = scalar_lea.sflag [#allocation11], %s2407_s29  ;;  %s2182_s8 = scalar_lea.vmem %s1592_s16, 128 }
0x16ac   : > { %p2183_p11 = scmp.ne.s32.totalorder %s1592_s16, %s2182_s8  ;;  %s2265_s18 = smov [#allocation10]  }
0x16ad   : > { %s2186_s14 = sshll.u32 %s2265_s18, 4  ;;  %s2187_s14 = int_to_ptr.vmem [resolvable:$false] %s2186_s14 }
0x16ae   : > { %p2184_p6 = pnand %p2183_p11, %p2785_p7  ;;  %s2188_s19 = scalar_lea.vmem %s2187_s14, 256 }
0x16af   : > { %p2189_p13 = scmp.lt.s32.totalorder %s1592_s16, %s2187_s14  ;;  %p2190_p3 = scmp.lt.s32.totalorder %s2188_s19, %s2182_s8 }
0x16b0   : > { %p2185_p12 = pneg %p2184_p6 }
0x16b1   : > { %p2191_p10 = por %p2190_p3, %p2189_p13 }
0x16b3   : > { %p2192_p0 = pnand %p2191_p10, %p2185_p12 }
0x16b5   : > { %2195 = shalt.err (!%p2192_p0)
}
0x16b6   : > { %s2196_s25 = scalar_lea.hbm %s2721_s26, 128  ;;  %s2200_s17 = scalar_lea.hbm %s2766_s6, 256 }
0x16b7   : > { %p2197_p2 = scmp.ne.s32.totalorder %s2721_s26, %s2196_s25  ;;  %p2201_p8 = scmp.lt.u32.totalorder %s2721_s26, %s2766_s6 }
0x16b8   : > { %p2202_p9 = scmp.lt.u32.totalorder %s2200_s17, %s2196_s25  ;;  %p2204_p11 = scmp.lt.u32.totalorder %s2196_s25, %s2721_s26 }
0x16b9   : > { %p2198_p4 = pnand %p2197_p2, %p2785_p7 }
0x16ba   : > { %p2203_p1 = por %p2202_p9, %p2201_p8 }
0x16bb   : > { %p2199_p5 = pneg %p2198_p4 }
0x16bc   : > { %p2205_p6 = por %p2204_p11, %p2203_p1 }
0x16be   : > { %p2206_p12 = pnand %p2205_p6, %p2199_p5 }
0x16c0   : > { %2209 = shalt.err (!%p2206_p12)
}
0x16c1   : > { %1987 = dma.vmem_to_hbm [thread:$0]  (%p2785_p7), %s1592_s16, 128, %s2721_s26, %s1565_s13  }
0x16c2 PF: > { %s1603_s20 = sand.u32 1, %s2240_s21   ;;  %p2786_p13 = scmp.ne.s32.totalorder %s2774_s10, 0 }
0x16c3   : > { %p2787_p3 = scmp.ge.s32.totalorder %s2252_s24, 2  ;;  %s1604_s15 = scalar_lea.sflag [#allocation8], %s1603_s20 }
0x16c5   : > { %p1995_p10 = pnand %p2787_p3, %p2786_p13 }
0x16c7   : > { %2231 = dma.done.wait (!%p1995_p10), %s1604_s15, 128  }
0x16c8   : > { %2233 = vsyncadd (!%p1995_p10), %s1604_s15, 4294967168  ;;  %s1613_s7 = scalar_lea.sflag [#allocation11], %s1603_s20 }
0x16c9   : > { %2235 = dma.done.wait (!%p1995_p10), %s1613_s7, 128  }
0x16ca   : > { %2237 = vsyncadd (!%p1995_p10), %s1613_s7, 4294967168  ;;  %s2788_s9 = sld [smem:[#allocation15_spill]]  ;;  %p23_p7 = scmp.ge.s32.totalorder %s2326_s27, 4  }
0x16cb   : > { %s2789_s21 = smov %s2244_s22  ;;  %s2790_s22 = smov %s2248_s23 }
0x16cc   : > { %s2792_s24 = smov %s2326_s27  ;;  %25 = sbr.rel (!%p23_p7) target bundleno = 9 (0x9), region = 158 }
0x16d0   : > { %s2791_s23 = smov %s2788_s9 }
0x16d3   :  { %1618 = vsyncpa [#allocation7], 1 }
0x16d4   :  { %1620 = vsyncpa [#allocation7 + $0x1], 1 }
0x16d5   :  { %1621 = vsyncpa [#allocation8], 1 }
0x16d6   :  { %1623 = vsyncpa [#allocation8 + $0x1], 1 }
0x16d7   :  { %1624 = vsyncpa [#allocation11], 1 }
0x16d8   :  { %1626 = vsyncpa [#allocation11 + $0x1], 1 }

</bundles_post_ra>
